<compile_context>
chip_gen: v7x
topology: tpu7x:2x2x1
jax: 0.10.0
libtpu: 0.0.40
codegen_flags: <defaults>
</compile_context>

<pallas_src>
import functools

import numpy as np
import jax
import jax.numpy as jnp
from jax import lax
from jax.experimental import pallas as pl
from jax.experimental.pallas import tpu as pltpu


# ------------------------------------------------------------------
# Fused forward kernel: conv1+relu+pool1 -> conv2+relu+pool2 -> fc1 -> fc2 -> fc3
# ------------------------------------------------------------------
def _lenet_fused_kernel(xin_ref, w1t_ref, b1t_ref, w2t_ref, b2t_ref,
                        w1f_ref, b1f_ref, w2f_ref, b2f_ref, w3f_ref, b3f_ref,
                        out_ref, p1_ref, p2_ref, pool2_ref, *, n_batch):
    f32 = jnp.float32
    bf16 = jnp.bfloat16
    N = n_batch
    blk = N * 8          # sublane-aligned rows per parity block; row r=7 / a2>=5 are pad rows

    # ---- conv1 patch assembly: ONE contiguous (<=blk x 128) copy per (di1, pa, i1) ----
    # p1 rows: (di1, pa, n, r) = di1*2*blk + pa*blk + n*8 + r   (pooled row a1 = 2*r + pa)
    # p1 cols: (i1, c0, w)     = i1*128 + c0*32 + w             (cols 96..127 of each tap are the
    #                                                            zero-padded xin columns)
    for di1 in range(2):
        for pa in range(2):
            dst0 = (2 * di1 + pa) * blk
            for i1 in range(5):
                m = 2 * pa + di1 + i1                 # input-row phase: input row h = 4*r + m
                src0 = (m % 4) * blk + (m // 4)       # xin rows are (h%4, n, h//4), stride 8 per image
                ln = blk - (m // 4)                   # when m>=4 the last (pad) row stays stale;
                                                      # it only feeds the never-read pooled row r=7
                p1_ref[dst0:dst0 + ln, i1 * 128:(i1 + 1) * 128] = xin_ref[src0:src0 + ln, :]

    # conv1 GEMM (bf16 operands, f32 acc) + bias + ReLU; out cols = (dj1, b1, c1) = dj1*128 + b1*6 + c1
    a1 = jnp.dot(p1_ref[...].astype(bf16), w1t_ref[...], preferred_element_type=f32)
    a1 = jnp.maximum(a1 + b1t_ref[...], 0.0)

    # pool1 (2x2, stride 2): aligned row-half max (di1) then aligned 128-lane column-half max (dj1).
    rmax1 = jnp.maximum(a1[0:2 * blk, :], a1[2 * blk:4 * blk, :])
    pooled1 = jnp.maximum(rmax1[:, 0:128], rmax1[:, 128:256])
    # pooled1: (2*blk, 128), rows (pa, n, r), cols (b1, c1) = b1*6 + c1; cols 84..127 are exact zeros.

    # ---- conv2 patch assembly: ONE contiguous copy per (di2, i2) ----
    # p2 rows: (di2, n, a2) = di2*blk + n*8 + a2 ; cols: (i2, pw, c1) = i2*128 + pw*6 + c1
    for di2 in range(2):
        dst0 = di2 * blk
        for i2 in range(5):
            q2 = (di2 + i2) % 2                       # parity of the needed pooled1 rows
            r2 = (di2 + i2) // 2                      # starting pooled1 row within that parity
            src0 = q2 * blk + r2
            ln = blk - r2                             # stays inside the q2 block; the few unwritten
                                                      # dest rows are pad rows (a2 >= 5), never read
            p2_ref[dst0:dst0 + ln, i2 * 128:(i2 + 1) * 128] = pooled1[src0:src0 + ln, :]

    # conv2 GEMM + bias + ReLU; out cols = (dj2, b2, c2) = dj2*128 + b2*16 + c2
    a2 = jnp.dot(p2_ref[...].astype(bf16), w2t_ref[...], preferred_element_type=f32)
    a2 = jnp.maximum(a2 + b2t_ref[...], 0.0)

    # pool2 (aligned halves again). pool2_ref rows (n, a2), cols (b2, c2); cols 80..127 exact zeros.
    rmax2 = jnp.maximum(a2[0:blk, :], a2[blk:2 * blk, :])
    pool2_ref[...] = jnp.maximum(rmax2[:, 0:128], rmax2[:, 128:256])

    # ---- flatten + fc1 as 5 accumulated GEMMs over a2 (no per-row copies, no fcin scratch) ----
    # torch's (c2, a2, b2) flatten order is folded into the per-a2 weight blocks at pack time.
    y = b1f_ref[...]                                           # (1,128) f32, broadcasts to (N,128)
    for a in range(5):
        lhs = pool2_ref[pl.ds(a, N, stride=8), :].astype(bf16)  # rows n*8 + a  ->  (N, 128)
        y = y + jnp.dot(lhs, w1f_ref[a], preferred_element_type=f32)
    y = jnp.maximum(y, 0.0)

    # ---- fc2 / fc3 (lane-dense 128-wide, zero-padded weights/bias) ----
    y = jnp.maximum(jnp.dot(y.astype(bf16), w2f_ref[...], preferred_element_type=f32)
                    + b2f_ref[...], 0.0)
    y = jnp.dot(y.astype(bf16), w3f_ref[...], preferred_element_type=f32) + b3f_ref[...]
    out_ref[...] = y                                           # lane-dense (N,128) store


def net_forward(packed, x_nchw):
    """x_nchw: (N, 3, 32, 32) float32 -> (N, 10) logits, matching the PyTorch Net."""
    N, C, H, W = x_nchw.shape
    assert (C, H, W) == (3, 32, 32)
    x = x_nchw.astype(jnp.float32)

    # Repack input: rows (h%4, n, h//4) with an 8-row stride per image, cols (c0, w) zero-padded
    # to 128 lanes (so every in-kernel patch copy is a full-128-lane slab and pad K columns are
    # exact zeros without any in-kernel zero fill).  Only XLA glue in the hot path.
    xr = jnp.transpose(x.reshape(N, 3, 8, 4, 32), (3, 0, 2, 1, 4)).reshape(4 * N * 8, 96)
    xin = jnp.pad(xr, ((0, 0), (0, 32)))

    blk = N * 8
    args = (xin, packed["W1t"], packed["b1t"], packed["W2t"], packed["b2t"],
            packed["W1f"], packed["b1f"], packed["W2f"], packed["b2f"],
            packed["W3f"], packed["b3f"])

    def _full_spec(a):
        zeros = (0,) * a.ndim
        return pl.BlockSpec(a.shape, lambda i, _z=zeros: _z)

    out = pl.pallas_call(
        functools.partial(_lenet_fused_kernel, n_batch=N),
        out_shape=jax.ShapeDtypeStruct((N, 128), jnp.float32),
        grid=(1,),
        in_specs=[_full_spec(a) for a in args],
        out_specs=pl.BlockSpec((N, 128), lambda i: (0, 0)),
        scratch_shapes=[
            pltpu.VMEM((4 * blk, 640), jnp.float32),   # conv1 patch matrix (8-row stride per image)
            pltpu.VMEM((2 * blk, 640), jnp.float32),   # conv2 patch matrix
            pltpu.VMEM((blk, 128), jnp.float32),       # pooled conv2 output (strided fc1 reads)
        ],
        compiler_params=pltpu.CompilerParams(
            dimension_semantics=("arbitrary",),
            vmem_limit_bytes=32 * 1024 * 1024),        # explicit, generation-portable budget
    )(*args)
    return out[:, :10]                                 # lane-dense kernel store, slice in XLA


# ------------------------------------------------------------------
# Parameter init (PyTorch-convention shapes) and one-time kernel repack
# ------------------------------------------------------------------
def init_params(key):
    """Deterministic init matching PyTorch default uniform bounds (1/sqrt(fan_in))."""
    def uni(k, shape, fan_in):
        bound = 1.0 / float(np.sqrt(fan_in))
        return jax.random.uniform(k, shape, jnp.float32, -bound, bound)

    ks = jax.random.split(key, 10)
    return {
        "conv1_w": uni(ks[0], (6, 3, 5, 5), 3 * 25),
        "conv1_b": uni(ks[1], (6,), 3 * 25),
        "conv2_w": uni(ks[2], (16, 6, 5, 5), 6 * 25),
        "conv2_b": uni(ks[3], (16,), 6 * 25),
        "fc1_w":   uni(ks[4], (120, 16 * 5 * 5), 16 * 5 * 5),
        "fc1_b":   uni(ks[5], (120,), 16 * 5 * 5),
        "fc2_w":   uni(ks[6], (84, 120), 120),
        "fc2_b":   uni(ks[7], (84,), 120),
        "fc3_w":   uni(ks[8], (10, 84), 84),
        "fc3_b":   uni(ks[9], (10,), 84),
    }


def pack_params(params):
    """One-time repack into the fused kernel's lane-aligned, zero-padded GEMM operands.
    All matmul weights are stored bf16 (MXU + DMA win); biases stay f32."""
    V1 = np.asarray(params["conv1_w"], np.float32)   # (6, 3, 5, 5)
    B1 = np.asarray(params["conv1_b"], np.float32)
    V2 = np.asarray(params["conv2_w"], np.float32)   # (16, 6, 5, 5)
    B2 = np.asarray(params["conv2_b"], np.float32)
    F1 = np.asarray(params["fc1_w"], np.float32)     # (120, 400)
    G1 = np.asarray(params["fc1_b"], np.float32)
    F2 = np.asarray(params["fc2_w"], np.float32)     # (84, 120)
    G2 = np.asarray(params["fc2_b"], np.float32)
    F3 = np.asarray(params["fc3_w"], np.float32)     # (10, 84)
    G3 = np.asarray(params["fc3_b"], np.float32)

    # conv1: K rows (i1, c0, w) = i1*128 + c0*32 + w (640); cols (dj1, b1, c1) = dj1*128 + b1*6 + c1 (256)
    W1t = np.zeros((640, 256), np.float32)
    b1t = np.zeros((1, 256), np.float32)
    c0_rows = np.arange(3) * 32
    c1_cols = np.arange(6)
    for dj1 in range(2):
        for b1 in range(14):
            w1 = 2 * b1 + dj1
            col0 = dj1 * 128 + b1 * 6
            b1t[0, col0:col0 + 6] = B1
            for i1 in range(5):
                for j1 in range(5):
                    rows = i1 * 128 + c0_rows + (w1 + j1)
                    W1t[rows[:, None], (col0 + c1_cols)[None, :]] = V1[:, :, i1, j1].T

    # conv2: K rows (i2, pw, c1) = i2*128 + pw*6 + c1 (640); cols (dj2, b2, c2) = dj2*128 + b2*16 + c2 (256)
    W2t = np.zeros((640, 256), np.float32)
    b2t = np.zeros((1, 256), np.float32)
    c1_rows = np.arange(6)
    c2_cols = np.arange(16)
    for dj2 in range(2):
        for b2 in range(5):
            w2 = 2 * b2 + dj2
            col0 = dj2 * 128 + b2 * 16
            b2t[0, col0:col0 + 16] = B2
            for i2 in range(5):
                for j2 in range(5):
                    rows = i2 * 128 + (w2 + j2) * 6 + c1_rows
                    W2t[rows[:, None], (col0 + c2_cols)[None, :]] = V2[:, :, i2, j2].T

    # fc1 split into 5 per-a2 blocks: W1f[a][b2*16 + c2, j] = F1[j, c2*25 + a*5 + b2]
    W1f = np.zeros((5, 128, 128), np.float32)
    W1f[:, :80, :120] = np.transpose(F1.reshape(120, 16, 5, 5), (2, 3, 1, 0)).reshape(5, 80, 120)
    b1f = np.zeros((1, 128), np.float32)
    b1f[0, :120] = G1

    W2f = np.zeros((128, 128), np.float32)
    W2f[:120, :84] = F2.T
    b2f = np.zeros((1, 128), np.float32)
    b2f[0, :84] = G2

    W3f = np.zeros((128, 128), np.float32)
    W3f[:84, :10] = F3.T
    b3f = np.zeros((1, 128), np.float32)
    b3f[0, :10] = G3

    bf = jnp.bfloat16
    return {
        "W1t": jnp.asarray(W1t, bf), "b1t": jnp.asarray(b1t),
        "W2t": jnp.asarray(W2t, bf), "b2t": jnp.asarray(b2t),
        "W1f": jnp.asarray(W1f, bf), "b1f": jnp.asarray(b1f),
        "W2f": jnp.asarray(W2f, bf), "b2f": jnp.asarray(b2f),
        "W3f": jnp.asarray(W3f, bf), "b3f": jnp.asarray(b3f),
    }


# ------------------------------------------------------------------
# Plain-JAX reference (for validation only)
# ------------------------------------------------------------------
def reference_forward(params, x):
    hi = lax.Precision.HIGHEST

    def conv(v, w, b):
        y = lax.conv_general_dilated(v, w, (1, 1), "VALID",
                                     dimension_numbers=("NCHW", "OIHW", "NCHW"),
                                     precision=hi)
        return y + b[None, :, None, None]

    def pool(v):
        n, c, h, w = v.shape
        return v.reshape(n, c, h // 2, 2, w // 2, 2).max(axis=(3, 5))

    y = pool(jax.nn.relu(conv(x, params["conv1_w"], params["conv1_b"])))
    y = pool(jax.nn.relu(conv(y, params["conv2_w"], params["conv2_b"])))
    y = y.reshape(y.shape[0], -1)
    y = jax.nn.relu(jnp.dot(y, params["fc1_w"].T, precision=hi) + params["fc1_b"])
    y = jax.nn.relu(jnp.dot(y, params["fc2_w"].T, precision=hi) + params["fc2_b"])
    return jnp.dot(y, params["fc3_w"].T, precision=hi) + params["fc3_b"]


if __name__ == "__main__":
    key = jax.random.PRNGKey(0)
    pkey, xkey = jax.random.split(key)
    params = init_params(pkey)
    packed = pack_params(params)          # one-time weight repack (kept out of the hot path)

    # Architecture requires 32x32 spatial input (16*5*5 flatten); batch = 2.
    x = jax.random.normal(xkey, (2, 3, 32, 32), jnp.float32)

    fwd = jax.jit(net_forward)
    out = jax.block_until_ready(fwd(packed, x))
    assert out.shape == (2, 10) and out.dtype == jnp.float32

    ref = jax.block_until_ready(reference_forward(params, x))
    if not np.allclose(np.asarray(out), np.asarray(ref), rtol=5e-2, atol=5e-2):
        raise AssertionError("Pallas kernel output does not match the JAX reference")

    print("KERNEL_OK")
</pallas_src>

<mosaic_0001>
module attributes {stable_mosaic.version = 11 : i64} {
  func.func @_lenet_fused_kernel(%arg0: i32, %arg1: memref<64x128xf32, #tpu.memory_space<vmem>>, %arg2: memref<640x256xbf16, #tpu.memory_space<vmem>>, %arg3: memref<1x256xf32, #tpu.memory_space<vmem>>, %arg4: memref<640x256xbf16, #tpu.memory_space<vmem>>, %arg5: memref<1x256xf32, #tpu.memory_space<vmem>>, %arg6: memref<5x128x128xbf16, #tpu.memory_space<vmem>>, %arg7: memref<1x128xf32, #tpu.memory_space<vmem>>, %arg8: memref<128x128xbf16, #tpu.memory_space<vmem>>, %arg9: memref<1x128xf32, #tpu.memory_space<vmem>>, %arg10: memref<128x128xbf16, #tpu.memory_space<vmem>>, %arg11: memref<1x128xf32, #tpu.memory_space<vmem>>, %arg12: memref<2x128xf32, #tpu.memory_space<vmem>>, %arg13: memref<64x640xf32, #tpu.memory_space<vmem>>, %arg14: memref<32x640xf32, #tpu.memory_space<vmem>>, %arg15: memref<16x128xf32, #tpu.memory_space<vmem>>) attributes {dimension_semantics = [#tpu.dimension_semantics<arbitrary>], iteration_bounds = array<i64: 1>, scalar_prefetch = 0 : i64, scratch_operands = 3 : i64, tpu.core_type = #tpu.core_type<tc>, window_params = [{pipeline_mode = #tpu.pipeline_mode<synchronous>, transform_indices = @transform_0, window_bounds = array<i64: 64, 128>}, {pipeline_mode = #tpu.pipeline_mode<synchronous>, transform_indices = @transform_1, window_bounds = array<i64: 640, 256>}, {pipeline_mode = #tpu.pipeline_mode<synchronous>, transform_indices = @transform_2, window_bounds = array<i64: 1, 256>}, {pipeline_mode = #tpu.pipeline_mode<synchronous>, transform_indices = @transform_3, window_bounds = array<i64: 640, 256>}, {pipeline_mode = #tpu.pipeline_mode<synchronous>, transform_indices = @transform_4, window_bounds = array<i64: 1, 256>}, {pipeline_mode = #tpu.pipeline_mode<synchronous>, transform_indices = @transform_5, window_bounds = array<i64: 5, 128, 128>}, {pipeline_mode = #tpu.pipeline_mode<synchronous>, transform_indices = @transform_6, window_bounds = array<i64: 1, 128>}, {pipeline_mode = #tpu.pipeline_mode<synchronous>, transform_indices = @transform_7, window_bounds = array<i64: 128, 128>}, {pipeline_mode = #tpu.pipeline_mode<synchronous>, transform_indices = @transform_8, window_bounds = array<i64: 1, 128>}, {pipeline_mode = #tpu.pipeline_mode<synchronous>, transform_indices = @transform_9, window_bounds = array<i64: 128, 128>}, {pipeline_mode = #tpu.pipeline_mode<synchronous>, transform_indices = @transform_10, window_bounds = array<i64: 1, 128>}, {pipeline_mode = #tpu.pipeline_mode<synchronous>, transform_indices = @transform_11, window_bounds = array<i64: 2, 128>}]} {
    %c0 = arith.constant 0 : index
    %c0_0 = arith.constant 0 : index
    %0 = vector.load %arg1[%c0, %c0_0] : memref<64x128xf32, #tpu.memory_space<vmem>>, vector<16x128xf32>
    %c0_1 = arith.constant 0 : index
    %c0_2 = arith.constant 0 : index
    %1 = vector.load %arg13[%c0_1, %c0_2] : memref<64x640xf32, #tpu.memory_space<vmem>>, vector<16x128xf32>
    tpu.vector_store %arg13[%c0_1, %c0_2], %0 {strides = array<i32>} : memref<64x640xf32, #tpu.memory_space<vmem>>, vector<16x128xf32>,
    %c16 = arith.constant 16 : index
    %c0_3 = arith.constant 0 : index
    %2 = vector.load %arg1[%c16, %c0_3] : memref<64x128xf32, #tpu.memory_space<vmem>>, vector<16x128xf32>
    %c0_4 = arith.constant 0 : index
    %c128 = arith.constant 128 : index
    %3 = vector.load %arg13[%c0_4, %c128] : memref<64x640xf32, #tpu.memory_space<vmem>>, vector<16x128xf32>
    tpu.vector_store %arg13[%c0_4, %c128], %2 {strides = array<i32>} : memref<64x640xf32, #tpu.memory_space<vmem>>, vector<16x128xf32>,
    %c32 = arith.constant 32 : index
    %c0_5 = arith.constant 0 : index
    %4 = vector.load %arg1[%c32, %c0_5] : memref<64x128xf32, #tpu.memory_space<vmem>>, vector<16x128xf32>
    %c0_6 = arith.constant 0 : index
    %c256 = arith.constant 256 : index
    %5 = vector.load %arg13[%c0_6, %c256] : memref<64x640xf32, #tpu.memory_space<vmem>>, vector<16x128xf32>
    tpu.vector_store %arg13[%c0_6, %c256], %4 {strides = array<i32>} : memref<64x640xf32, #tpu.memory_space<vmem>>, vector<16x128xf32>,
    %c48 = arith.constant 48 : index
    %c0_7 = arith.constant 0 : index
    %6 = vector.load %arg1[%c48, %c0_7] : memref<64x128xf32, #tpu.memory_space<vmem>>, vector<16x128xf32>
    %c0_8 = arith.constant 0 : index
    %c384 = arith.constant 384 : index
    %7 = vector.load %arg13[%c0_8, %c384] : memref<64x640xf32, #tpu.memory_space<vmem>>, vector<16x128xf32>
    tpu.vector_store %arg13[%c0_8, %c384], %6 {strides = array<i32>} : memref<64x640xf32, #tpu.memory_space<vmem>>, vector<16x128xf32>,
    %c1 = arith.constant 1 : index
    %c0_9 = arith.constant 0 : index
    %8 = vector.load %arg1[%c1, %c0_9] : memref<64x128xf32, #tpu.memory_space<vmem>>, vector<15x128xf32>
    %c0_10 = arith.constant 0 : index
    %c512 = arith.constant 512 : index
    %9 = vector.load %arg13[%c0_10, %c512] : memref<64x640xf32, #tpu.memory_space<vmem>>, vector<15x128xf32>
    tpu.vector_store %arg13[%c0_10, %c512], %8 {strides = array<i32>} : memref<64x640xf32, #tpu.memory_space<vmem>>, vector<15x128xf32>,
    %c32_11 = arith.constant 32 : index
    %c0_12 = arith.constant 0 : index
    %10 = vector.load %arg1[%c32_11, %c0_12] : memref<64x128xf32, #tpu.memory_space<vmem>>, vector<16x128xf32>
    %c16_13 = arith.constant 16 : index
    %c0_14 = arith.constant 0 : index
    %11 = vector.load %arg13[%c16_13, %c0_14] : memref<64x640xf32, #tpu.memory_space<vmem>>, vector<16x128xf32>
    tpu.vector_store %arg13[%c16_13, %c0_14], %10 {strides = array<i32>} : memref<64x640xf32, #tpu.memory_space<vmem>>, vector<16x128xf32>,
    %c48_15 = arith.constant 48 : index
    %c0_16 = arith.constant 0 : index
    %12 = vector.load %arg1[%c48_15, %c0_16] : memref<64x128xf32, #tpu.memory_space<vmem>>, vector<16x128xf32>
    %c16_17 = arith.constant 16 : index
    %c128_18 = arith.constant 128 : index
    %13 = vector.load %arg13[%c16_17, %c128_18] : memref<64x640xf32, #tpu.memory_space<vmem>>, vector<16x128xf32>
    tpu.vector_store %arg13[%c16_17, %c128_18], %12 {strides = array<i32>} : memref<64x640xf32, #tpu.memory_space<vmem>>, vector<16x128xf32>,
    %c1_19 = arith.constant 1 : index
    %c0_20 = arith.constant 0 : index
    %14 = vector.load %arg1[%c1_19, %c0_20] : memref<64x128xf32, #tpu.memory_space<vmem>>, vector<15x128xf32>
    %c16_21 = arith.constant 16 : index
    %c256_22 = arith.constant 256 : index
    %15 = vector.load %arg13[%c16_21, %c256_22] : memref<64x640xf32, #tpu.memory_space<vmem>>, vector<15x128xf32>
    tpu.vector_store %arg13[%c16_21, %c256_22], %14 {strides = array<i32>} : memref<64x640xf32, #tpu.memory_space<vmem>>, vector<15x128xf32>,
    %c17 = arith.constant 17 : index
    %c0_23 = arith.constant 0 : index
    %16 = vector.load %arg1[%c17, %c0_23] : memref<64x128xf32, #tpu.memory_space<vmem>>, vector<15x128xf32>
    %c16_24 = arith.constant 16 : index
    %c384_25 = arith.constant 384 : index
    %17 = vector.load %arg13[%c16_24, %c384_25] : memref<64x640xf32, #tpu.memory_space<vmem>>, vector<15x128xf32>
    tpu.vector_store %arg13[%c16_24, %c384_25], %16 {strides = array<i32>} : memref<64x640xf32, #tpu.memory_space<vmem>>, vector<15x128xf32>,
    %c33 = arith.constant 33 : index
    %c0_26 = arith.constant 0 : index
    %18 = vector.load %arg1[%c33, %c0_26] : memref<64x128xf32, #tpu.memory_space<vmem>>, vector<15x128xf32>
    %c16_27 = arith.constant 16 : index
    %c512_28 = arith.constant 512 : index
    %19 = vector.load %arg13[%c16_27, %c512_28] : memref<64x640xf32, #tpu.memory_space<vmem>>, vector<15x128xf32>
    tpu.vector_store %arg13[%c16_27, %c512_28], %18 {strides = array<i32>} : memref<64x640xf32, #tpu.memory_space<vmem>>, vector<15x128xf32>,
    %c16_29 = arith.constant 16 : index
    %c0_30 = arith.constant 0 : index
    %20 = vector.load %arg1[%c16_29, %c0_30] : memref<64x128xf32, #tpu.memory_space<vmem>>, vector<16x128xf32>
    %c32_31 = arith.constant 32 : index
    %c0_32 = arith.constant 0 : index
    %21 = vector.load %arg13[%c32_31, %c0_32] : memref<64x640xf32, #tpu.memory_space<vmem>>, vector<16x128xf32>
    tpu.vector_store %arg13[%c32_31, %c0_32], %20 {strides = array<i32>} : memref<64x640xf32, #tpu.memory_space<vmem>>, vector<16x128xf32>,
    %c32_33 = arith.constant 32 : index
    %c0_34 = arith.constant 0 : index
    %22 = vector.load %arg1[%c32_33, %c0_34] : memref<64x128xf32, #tpu.memory_space<vmem>>, vector<16x128xf32>
    %c32_35 = arith.constant 32 : index
    %c128_36 = arith.constant 128 : index
    %23 = vector.load %arg13[%c32_35, %c128_36] : memref<64x640xf32, #tpu.memory_space<vmem>>, vector<16x128xf32>
    tpu.vector_store %arg13[%c32_35, %c128_36], %22 {strides = array<i32>} : memref<64x640xf32, #tpu.memory_space<vmem>>, vector<16x128xf32>,
    %c48_37 = arith.constant 48 : index
    %c0_38 = arith.constant 0 : index
    %24 = vector.load %arg1[%c48_37, %c0_38] : memref<64x128xf32, #tpu.memory_space<vmem>>, vector<16x128xf32>
    %c32_39 = arith.constant 32 : index
    %c256_40 = arith.constant 256 : index
    %25 = vector.load %arg13[%c32_39, %c256_40] : memref<64x640xf32, #tpu.memory_space<vmem>>, vector<16x128xf32>
    tpu.vector_store %arg13[%c32_39, %c256_40], %24 {strides = array<i32>} : memref<64x640xf32, #tpu.memory_space<vmem>>, vector<16x128xf32>,
    %c1_41 = arith.constant 1 : index
    %c0_42 = arith.constant 0 : index
    %26 = vector.load %arg1[%c1_41, %c0_42] : memref<64x128xf32, #tpu.memory_space<vmem>>, vector<15x128xf32>
    %c32_43 = arith.constant 32 : index
    %c384_44 = arith.constant 384 : index
    %27 = vector.load %arg13[%c32_43, %c384_44] : memref<64x640xf32, #tpu.memory_space<vmem>>, vector<15x128xf32>
    tpu.vector_store %arg13[%c32_43, %c384_44], %26 {strides = array<i32>} : memref<64x640xf32, #tpu.memory_space<vmem>>, vector<15x128xf32>,
    %c17_45 = arith.constant 17 : index
    %c0_46 = arith.constant 0 : index
    %28 = vector.load %arg1[%c17_45, %c0_46] : memref<64x128xf32, #tpu.memory_space<vmem>>, vector<15x128xf32>
    %c32_47 = arith.constant 32 : index
    %c512_48 = arith.constant 512 : index
    %29 = vector.load %arg13[%c32_47, %c512_48] : memref<64x640xf32, #tpu.memory_space<vmem>>, vector<15x128xf32>
    tpu.vector_store %arg13[%c32_47, %c512_48], %28 {strides = array<i32>} : memref<64x640xf32, #tpu.memory_space<vmem>>, vector<15x128xf32>,
    %c48_49 = arith.constant 48 : index
    %c0_50 = arith.constant 0 : index
    %30 = vector.load %arg1[%c48_49, %c0_50] : memref<64x128xf32, #tpu.memory_space<vmem>>, vector<16x128xf32>
    %c48_51 = arith.constant 48 : index
    %c0_52 = arith.constant 0 : index
    %31 = vector.load %arg13[%c48_51, %c0_52] : memref<64x640xf32, #tpu.memory_space<vmem>>, vector<16x128xf32>
    tpu.vector_store %arg13[%c48_51, %c0_52], %30 {strides = array<i32>} : memref<64x640xf32, #tpu.memory_space<vmem>>, vector<16x128xf32>,
    %c1_53 = arith.constant 1 : index
    %c0_54 = arith.constant 0 : index
    %32 = vector.load %arg1[%c1_53, %c0_54] : memref<64x128xf32, #tpu.memory_space<vmem>>, vector<15x128xf32>
    %c48_55 = arith.constant 48 : index
    %c128_56 = arith.constant 128 : index
    %33 = vector.load %arg13[%c48_55, %c128_56] : memref<64x640xf32, #tpu.memory_space<vmem>>, vector<15x128xf32>
    tpu.vector_store %arg13[%c48_55, %c128_56], %32 {strides = array<i32>} : memref<64x640xf32, #tpu.memory_space<vmem>>, vector<15x128xf32>,
    %c17_57 = arith.constant 17 : index
    %c0_58 = arith.constant 0 : index
    %34 = vector.load %arg1[%c17_57, %c0_58] : memref<64x128xf32, #tpu.memory_space<vmem>>, vector<15x128xf32>
    %c48_59 = arith.constant 48 : index
    %c256_60 = arith.constant 256 : index
    %35 = vector.load %arg13[%c48_59, %c256_60] : memref<64x640xf32, #tpu.memory_space<vmem>>, vector<15x128xf32>
    tpu.vector_store %arg13[%c48_59, %c256_60], %34 {strides = array<i32>} : memref<64x640xf32, #tpu.memory_space<vmem>>, vector<15x128xf32>,
    %c33_61 = arith.constant 33 : index
    %c0_62 = arith.constant 0 : index
    %36 = vector.load %arg1[%c33_61, %c0_62] : memref<64x128xf32, #tpu.memory_space<vmem>>, vector<15x128xf32>
    %c48_63 = arith.constant 48 : index
    %c384_64 = arith.constant 384 : index
    %37 = vector.load %arg13[%c48_63, %c384_64] : memref<64x640xf32, #tpu.memory_space<vmem>>, vector<15x128xf32>
    tpu.vector_store %arg13[%c48_63, %c384_64], %36 {strides = array<i32>} : memref<64x640xf32, #tpu.memory_space<vmem>>, vector<15x128xf32>,
    %c49 = arith.constant 49 : index
    %c0_65 = arith.constant 0 : index
    %38 = vector.load %arg1[%c49, %c0_65] : memref<64x128xf32, #tpu.memory_space<vmem>>, vector<15x128xf32>
    %c48_66 = arith.constant 48 : index
    %c512_67 = arith.constant 512 : index
    %39 = vector.load %arg13[%c48_66, %c512_67] : memref<64x640xf32, #tpu.memory_space<vmem>>, vector<15x128xf32>
    tpu.vector_store %arg13[%c48_66, %c512_67], %38 {strides = array<i32>} : memref<64x640xf32, #tpu.memory_space<vmem>>, vector<15x128xf32>,
    %c0_68 = arith.constant 0 : index
    %c0_69 = arith.constant 0 : index
    %40 = vector.load %arg13[%c0_68, %c0_69] : memref<64x640xf32, #tpu.memory_space<vmem>>, vector<64x640xf32>
    %41 = arith.truncf %40 : vector<64x640xf32> to vector<64x640xbf16>
    %c0_70 = arith.constant 0 : index
    %c0_71 = arith.constant 0 : index
    %42 = vector.load %arg2[%c0_70, %c0_71] : memref<640x256xbf16, #tpu.memory_space<vmem>>, vector<640x256xbf16>
    %cst = arith.constant dense<0.000000e+00> : vector<64x256xf32>
    %43 = tpu.matmul %41, %42, %cst {dimension_numbers = #tpu.dot_dimension_numbers<[1], [0], [0], [1], [0, 0, 1, 1], [], []>} : vector<64x640xbf16>, vector<640x256xbf16>, vector<64x256xf32> -> vector<64x256xf32>
    %c0_72 = arith.constant 0 : index
    %c0_73 = arith.constant 0 : index
    %44 = vector.load %arg3[%c0_72, %c0_73] : memref<1x256xf32, #tpu.memory_space<vmem>>, vector<1x256xf32>
    %45 = vector.broadcast %44 : vector<1x256xf32> to vector<64x256xf32>
    %46 = arith.addf %43, %45 : vector<64x256xf32>
    %cst_74 = arith.constant 0.000000e+00 : f32
    %47 = vector.broadcast %cst_74 : f32 to vector<64x256xf32>
    %48 = arith.maximumf %46, %47 : vector<64x256xf32>
    %49 = vector.extract_strided_slice %48 {offsets = [0, 0], sizes = [32, 256], strides = [1, 1]} : vector<64x256xf32> to vector<32x256xf32>
    %50 = vector.extract_strided_slice %48 {offsets = [32, 0], sizes = [32, 256], strides = [1, 1]} : vector<64x256xf32> to vector<32x256xf32>
    %51 = arith.maximumf %49, %50 : vector<32x256xf32>
    %52 = vector.extract_strided_slice %51 {offsets = [0, 0], sizes = [32, 128], strides = [1, 1]} : vector<32x256xf32> to vector<32x128xf32>
    %53 = vector.extract_strided_slice %51 {offsets = [0, 128], sizes = [32, 128], strides = [1, 1]} : vector<32x256xf32> to vector<32x128xf32>
    %54 = arith.maximumf %52, %53 : vector<32x128xf32>
    %55 = vector.extract_strided_slice %54 {offsets = [0, 0], sizes = [16, 128], strides = [1, 1]} : vector<32x128xf32> to vector<16x128xf32>
    %c0_75 = arith.constant 0 : index
    %c0_76 = arith.constant 0 : index
    %56 = vector.load %arg14[%c0_75, %c0_76] : memref<32x640xf32, #tpu.memory_space<vmem>>, vector<16x128xf32>
    tpu.vector_store %arg14[%c0_75, %c0_76], %55 {strides = array<i32>} : memref<32x640xf32, #tpu.memory_space<vmem>>, vector<16x128xf32>,
    %57 = vector.extract_strided_slice %54 {offsets = [16, 0], sizes = [16, 128], strides = [1, 1]} : vector<32x128xf32> to vector<16x128xf32>
    %c0_77 = arith.constant 0 : index
    %c128_78 = arith.constant 128 : index
    %58 = vector.load %arg14[%c0_77, %c128_78] : memref<32x640xf32, #tpu.memory_space<vmem>>, vector<16x128xf32>
    tpu.vector_store %arg14[%c0_77, %c128_78], %57 {strides = array<i32>} : memref<32x640xf32, #tpu.memory_space<vmem>>, vector<16x128xf32>,
    %59 = vector.extract_strided_slice %54 {offsets = [1, 0], sizes = [15, 128], strides = [1, 1]} : vector<32x128xf32> to vector<15x128xf32>
    %c0_79 = arith.constant 0 : index
    %c256_80 = arith.constant 256 : index
    %60 = vector.load %arg14[%c0_79, %c256_80] : memref<32x640xf32, #tpu.memory_space<vmem>>, vector<15x128xf32>
    tpu.vector_store %arg14[%c0_79, %c256_80], %59 {strides = array<i32>} : memref<32x640xf32, #tpu.memory_space<vmem>>, vector<15x128xf32>,
    %61 = vector.extract_strided_slice %54 {offsets = [17, 0], sizes = [15, 128], strides = [1, 1]} : vector<32x128xf32> to vector<15x128xf32>
    %c0_81 = arith.constant 0 : index
    %c384_82 = arith.constant 384 : index
    %62 = vector.load %arg14[%c0_81, %c384_82] : memref<32x640xf32, #tpu.memory_space<vmem>>, vector<15x128xf32>
    tpu.vector_store %arg14[%c0_81, %c384_82], %61 {strides = array<i32>} : memref<32x640xf32, #tpu.memory_space<vmem>>, vector<15x128xf32>,
    %63 = vector.extract_strided_slice %54 {offsets = [2, 0], sizes = [14, 128], strides = [1, 1]} : vector<32x128xf32> to vector<14x128xf32>
    %c0_83 = arith.constant 0 : index
    %c512_84 = arith.constant 512 : index
    %64 = vector.load %arg14[%c0_83, %c512_84] : memref<32x640xf32, #tpu.memory_space<vmem>>, vector<14x128xf32>
    tpu.vector_store %arg14[%c0_83, %c512_84], %63 {strides = array<i32>} : memref<32x640xf32, #tpu.memory_space<vmem>>, vector<14x128xf32>,
    %65 = vector.extract_strided_slice %54 {offsets = [16, 0], sizes = [16, 128], strides = [1, 1]} : vector<32x128xf32> to vector<16x128xf32>
    %c16_85 = arith.constant 16 : index
    %c0_86 = arith.constant 0 : index
    %66 = vector.load %arg14[%c16_85, %c0_86] : memref<32x640xf32, #tpu.memory_space<vmem>>, vector<16x128xf32>
    tpu.vector_store %arg14[%c16_85, %c0_86], %65 {strides = array<i32>} : memref<32x640xf32, #tpu.memory_space<vmem>>, vector<16x128xf32>,
    %67 = vector.extract_strided_slice %54 {offsets = [1, 0], sizes = [15, 128], strides = [1, 1]} : vector<32x128xf32> to vector<15x128xf32>
    %c16_87 = arith.constant 16 : index
    %c128_88 = arith.constant 128 : index
    %68 = vector.load %arg14[%c16_87, %c128_88] : memref<32x640xf32, #tpu.memory_space<vmem>>, vector<15x128xf32>
    tpu.vector_store %arg14[%c16_87, %c128_88], %67 {strides = array<i32>} : memref<32x640xf32, #tpu.memory_space<vmem>>, vector<15x128xf32>,
    %69 = vector.extract_strided_slice %54 {offsets = [17, 0], sizes = [15, 128], strides = [1, 1]} : vector<32x128xf32> to vector<15x128xf32>
    %c16_89 = arith.constant 16 : index
    %c256_90 = arith.constant 256 : index
    %70 = vector.load %arg14[%c16_89, %c256_90] : memref<32x640xf32, #tpu.memory_space<vmem>>, vector<15x128xf32>
    tpu.vector_store %arg14[%c16_89, %c256_90], %69 {strides = array<i32>} : memref<32x640xf32, #tpu.memory_space<vmem>>, vector<15x128xf32>,
    %71 = vector.extract_strided_slice %54 {offsets = [2, 0], sizes = [14, 128], strides = [1, 1]} : vector<32x128xf32> to vector<14x128xf32>
    %c16_91 = arith.constant 16 : index
    %c384_92 = arith.constant 384 : index
    %72 = vector.load %arg14[%c16_91, %c384_92] : memref<32x640xf32, #tpu.memory_space<vmem>>, vector<14x128xf32>
    tpu.vector_store %arg14[%c16_91, %c384_92], %71 {strides = array<i32>} : memref<32x640xf32, #tpu.memory_space<vmem>>, vector<14x128xf32>,
    %73 = vector.extract_strided_slice %54 {offsets = [18, 0], sizes = [14, 128], strides = [1, 1]} : vector<32x128xf32> to vector<14x128xf32>
    %c16_93 = arith.constant 16 : index
    %c512_94 = arith.constant 512 : index
    %74 = vector.load %arg14[%c16_93, %c512_94] : memref<32x640xf32, #tpu.memory_space<vmem>>, vector<14x128xf32>
    tpu.vector_store %arg14[%c16_93, %c512_94], %73 {strides = array<i32>} : memref<32x640xf32, #tpu.memory_space<vmem>>, vector<14x128xf32>,
    %c0_95 = arith.constant 0 : index
    %c0_96 = arith.constant 0 : index
    %75 = vector.load %arg14[%c0_95, %c0_96] : memref<32x640xf32, #tpu.memory_space<vmem>>, vector<32x640xf32>
    %76 = arith.truncf %75 : vector<32x640xf32> to vector<32x640xbf16>
    %c0_97 = arith.constant 0 : index
    %c0_98 = arith.constant 0 : index
    %77 = vector.load %arg4[%c0_97, %c0_98] : memref<640x256xbf16, #tpu.memory_space<vmem>>, vector<640x256xbf16>
    %cst_99 = arith.constant dense<0.000000e+00> : vector<32x256xf32>
    %78 = tpu.matmul %76, %77, %cst_99 {dimension_numbers = #tpu.dot_dimension_numbers<[1], [0], [0], [1], [0, 0, 1, 1], [], []>} : vector<32x640xbf16>, vector<640x256xbf16>, vector<32x256xf32> -> vector<32x256xf32>
    %c0_100 = arith.constant 0 : index
    %c0_101 = arith.constant 0 : index
    %79 = vector.load %arg5[%c0_100, %c0_101] : memref<1x256xf32, #tpu.memory_space<vmem>>, vector<1x256xf32>
    %80 = vector.broadcast %79 : vector<1x256xf32> to vector<32x256xf32>
    %81 = arith.addf %78, %80 : vector<32x256xf32>
    %cst_102 = arith.constant 0.000000e+00 : f32
    %82 = vector.broadcast %cst_102 : f32 to vector<32x256xf32>
    %83 = arith.maximumf %81, %82 : vector<32x256xf32>
    %84 = vector.extract_strided_slice %83 {offsets = [0, 0], sizes = [16, 256], strides = [1, 1]} : vector<32x256xf32> to vector<16x256xf32>
    %85 = vector.extract_strided_slice %83 {offsets = [16, 0], sizes = [16, 256], strides = [1, 1]} : vector<32x256xf32> to vector<16x256xf32>
    %86 = arith.maximumf %84, %85 : vector<16x256xf32>
    %87 = vector.extract_strided_slice %86 {offsets = [0, 0], sizes = [16, 128], strides = [1, 1]} : vector<16x256xf32> to vector<16x128xf32>
    %88 = vector.extract_strided_slice %86 {offsets = [0, 128], sizes = [16, 128], strides = [1, 1]} : vector<16x256xf32> to vector<16x128xf32>
    %89 = arith.maximumf %87, %88 : vector<16x128xf32>
    %c0_103 = arith.constant 0 : index
    %c0_104 = arith.constant 0 : index
    %90 = vector.load %arg15[%c0_103, %c0_104] : memref<16x128xf32, #tpu.memory_space<vmem>>, vector<16x128xf32>
    tpu.vector_store %arg15[%c0_103, %c0_104], %89 {strides = array<i32>} : memref<16x128xf32, #tpu.memory_space<vmem>>, vector<16x128xf32>,
    %c0_105 = arith.constant 0 : index
    %c0_106 = arith.constant 0 : index
    %91 = vector.load %arg7[%c0_105, %c0_106] : memref<1x128xf32, #tpu.memory_space<vmem>>, vector<1x128xf32>
    %c0_107 = arith.constant 0 : index
    %c0_108 = arith.constant 0 : index
    %92 = tpu.strided_load %arg15[%c0_107, %c0_108] {strides = array<i32: 8, 1>} : memref<16x128xf32, #tpu.memory_space<vmem>>, vector<2x128xf32>
    %93 = arith.truncf %92 : vector<2x128xf32> to vector<2x128xbf16>
    %c0_109 = arith.constant 0 : index
    %c0_110 = arith.constant 0 : index
    %c0_111 = arith.constant 0 : index
    %94 = vector.load %arg6[%c0_109, %c0_110, %c0_111] : memref<5x128x128xbf16, #tpu.memory_space<vmem>>, vector<1x128x128xbf16>
    %95 = vector.shape_cast %94 : vector<1x128x128xbf16> to vector<128x128xbf16>
    %cst_112 = arith.constant dense<0.000000e+00> : vector<2x128xf32>
    %96 = tpu.matmul %93, %95, %cst_112 {dimension_numbers = #tpu.dot_dimension_numbers<[1], [0], [0], [1], [0, 0, 1, 1], [], []>} : vector<2x128xbf16>, vector<128x128xbf16>, vector<2x128xf32> -> vector<2x128xf32>
    %97 = vector.broadcast %91 : vector<1x128xf32> to vector<2x128xf32>
    %98 = arith.addf %97, %96 : vector<2x128xf32>
    %c1_113 = arith.constant 1 : index
    %c0_114 = arith.constant 0 : index
    %99 = tpu.strided_load %arg15[%c1_113, %c0_114] {strides = array<i32: 8, 1>} : memref<16x128xf32, #tpu.memory_space<vmem>>, vector<2x128xf32>
    %100 = arith.truncf %99 : vector<2x128xf32> to vector<2x128xbf16>
    %c1_115 = arith.constant 1 : index
    %c0_116 = arith.constant 0 : index
    %c0_117 = arith.constant 0 : index
    %101 = vector.load %arg6[%c1_115, %c0_116, %c0_117] : memref<5x128x128xbf16, #tpu.memory_space<vmem>>, vector<1x128x128xbf16>
    %102 = vector.shape_cast %101 : vector<1x128x128xbf16> to vector<128x128xbf16>
    %cst_118 = arith.constant dense<0.000000e+00> : vector<2x128xf32>
    %103 = tpu.matmul %100, %102, %cst_118 {dimension_numbers = #tpu.dot_dimension_numbers<[1], [0], [0], [1], [0, 0, 1, 1], [], []>} : vector<2x128xbf16>, vector<128x128xbf16>, vector<2x128xf32> -> vector<2x128xf32>
    %104 = arith.addf %98, %103 : vector<2x128xf32>
    %c2 = arith.constant 2 : index
    %c0_119 = arith.constant 0 : index
    %105 = tpu.strided_load %arg15[%c2, %c0_119] {strides = array<i32: 8, 1>} : memref<16x128xf32, #tpu.memory_space<vmem>>, vector<2x128xf32>
    %106 = arith.truncf %105 : vector<2x128xf32> to vector<2x128xbf16>
    %c2_120 = arith.constant 2 : index
    %c0_121 = arith.constant 0 : index
    %c0_122 = arith.constant 0 : index
    %107 = vector.load %arg6[%c2_120, %c0_121, %c0_122] : memref<5x128x128xbf16, #tpu.memory_space<vmem>>, vector<1x128x128xbf16>
    %108 = vector.shape_cast %107 : vector<1x128x128xbf16> to vector<128x128xbf16>
    %cst_123 = arith.constant dense<0.000000e+00> : vector<2x128xf32>
    %109 = tpu.matmul %106, %108, %cst_123 {dimension_numbers = #tpu.dot_dimension_numbers<[1], [0], [0], [1], [0, 0, 1, 1], [], []>} : vector<2x128xbf16>, vector<128x128xbf16>, vector<2x128xf32> -> vector<2x128xf32>
    %110 = arith.addf %104, %109 : vector<2x128xf32>
    %c3 = arith.constant 3 : index
    %c0_124 = arith.constant 0 : index
    %111 = tpu.strided_load %arg15[%c3, %c0_124] {strides = array<i32: 8, 1>} : memref<16x128xf32, #tpu.memory_space<vmem>>, vector<2x128xf32>
    %112 = arith.truncf %111 : vector<2x128xf32> to vector<2x128xbf16>
    %c3_125 = arith.constant 3 : index
    %c0_126 = arith.constant 0 : index
    %c0_127 = arith.constant 0 : index
    %113 = vector.load %arg6[%c3_125, %c0_126, %c0_127] : memref<5x128x128xbf16, #tpu.memory_space<vmem>>, vector<1x128x128xbf16>
    %114 = vector.shape_cast %113 : vector<1x128x128xbf16> to vector<128x128xbf16>
    %cst_128 = arith.constant dense<0.000000e+00> : vector<2x128xf32>
    %115 = tpu.matmul %112, %114, %cst_128 {dimension_numbers = #tpu.dot_dimension_numbers<[1], [0], [0], [1], [0, 0, 1, 1], [], []>} : vector<2x128xbf16>, vector<128x128xbf16>, vector<2x128xf32> -> vector<2x128xf32>
    %116 = arith.addf %110, %115 : vector<2x128xf32>
    %c4 = arith.constant 4 : index
    %c0_129 = arith.constant 0 : index
    %117 = tpu.strided_load %arg15[%c4, %c0_129] {strides = array<i32: 8, 1>} : memref<16x128xf32, #tpu.memory_space<vmem>>, vector<2x128xf32>
    %118 = arith.truncf %117 : vector<2x128xf32> to vector<2x128xbf16>
    %c4_130 = arith.constant 4 : index
    %c0_131 = arith.constant 0 : index
    %c0_132 = arith.constant 0 : index
    %119 = vector.load %arg6[%c4_130, %c0_131, %c0_132] : memref<5x128x128xbf16, #tpu.memory_space<vmem>>, vector<1x128x128xbf16>
    %120 = vector.shape_cast %119 : vector<1x128x128xbf16> to vector<128x128xbf16>
    %cst_133 = arith.constant dense<0.000000e+00> : vector<2x128xf32>
    %121 = tpu.matmul %118, %120, %cst_133 {dimension_numbers = #tpu.dot_dimension_numbers<[1], [0], [0], [1], [0, 0, 1, 1], [], []>} : vector<2x128xbf16>, vector<128x128xbf16>, vector<2x128xf32> -> vector<2x128xf32>
    %122 = arith.addf %116, %121 : vector<2x128xf32>
    %cst_134 = arith.constant 0.000000e+00 : f32
    %123 = vector.broadcast %cst_134 : f32 to vector<2x128xf32>
    %124 = arith.maximumf %122, %123 : vector<2x128xf32>
    %125 = arith.truncf %124 : vector<2x128xf32> to vector<2x128xbf16>
    %c0_135 = arith.constant 0 : index
    %c0_136 = arith.constant 0 : index
    %126 = vector.load %arg8[%c0_135, %c0_136] : memref<128x128xbf16, #tpu.memory_space<vmem>>, vector<128x128xbf16>
    %cst_137 = arith.constant dense<0.000000e+00> : vector<2x128xf32>
    %127 = tpu.matmul %125, %126, %cst_137 {dimension_numbers = #tpu.dot_dimension_numbers<[1], [0], [0], [1], [0, 0, 1, 1], [], []>} : vector<2x128xbf16>, vector<128x128xbf16>, vector<2x128xf32> -> vector<2x128xf32>
    %c0_138 = arith.constant 0 : index
    %c0_139 = arith.constant 0 : index
    %128 = vector.load %arg9[%c0_138, %c0_139] : memref<1x128xf32, #tpu.memory_space<vmem>>, vector<1x128xf32>
    %129 = vector.broadcast %128 : vector<1x128xf32> to vector<2x128xf32>
    %130 = arith.addf %127, %129 : vector<2x128xf32>
    %cst_140 = arith.constant 0.000000e+00 : f32
    %131 = vector.broadcast %cst_140 : f32 to vector<2x128xf32>
    %132 = arith.maximumf %130, %131 : vector<2x128xf32>
    %133 = arith.truncf %132 : vector<2x128xf32> to vector<2x128xbf16>
    %c0_141 = arith.constant 0 : index
    %c0_142 = arith.constant 0 : index
    %134 = vector.load %arg10[%c0_141, %c0_142] : memref<128x128xbf16, #tpu.memory_space<vmem>>, vector<128x128xbf16>
    %cst_143 = arith.constant dense<0.000000e+00> : vector<2x128xf32>
    %135 = tpu.matmul %133, %134, %cst_143 {dimension_numbers = #tpu.dot_dimension_numbers<[1], [0], [0], [1], [0, 0, 1, 1], [], []>} : vector<2x128xbf16>, vector<128x128xbf16>, vector<2x128xf32> -> vector<2x128xf32>
    %c0_144 = arith.constant 0 : index
    %c0_145 = arith.constant 0 : index
    %136 = vector.load %arg11[%c0_144, %c0_145] : memref<1x128xf32, #tpu.memory_space<vmem>>, vector<1x128xf32>
    %137 = vector.broadcast %136 : vector<1x128xf32> to vector<2x128xf32>
    %138 = arith.addf %135, %137 : vector<2x128xf32>
    %c0_146 = arith.constant 0 : index
    %c0_147 = arith.constant 0 : index
    %139 = vector.load %arg12[%c0_146, %c0_147] : memref<2x128xf32, #tpu.memory_space<vmem>>, vector<2x128xf32>
    tpu.vector_store %arg12[%c0_146, %c0_147], %138 {strides = array<i32>} : memref<2x128xf32, #tpu.memory_space<vmem>>, vector<2x128xf32>,
    return
  }
  func.func @transform_0(%arg0: i32) -> (i32, i32) {
    %c0_i32 = arith.constant 0 : i32
    %c0_i32_0 = arith.constant 0 : i32
    %c0_i32_1 = arith.constant 0 : i32
    return %c0_i32, %c0_i32_0 : i32, i32
  }
  func.func @transform_1(%arg0: i32) -> (i32, i32) {
    %c0_i32 = arith.constant 0 : i32
    %c0_i32_0 = arith.constant 0 : i32
    %c0_i32_1 = arith.constant 0 : i32
    return %c0_i32, %c0_i32_0 : i32, i32
  }
  func.func @transform_2(%arg0: i32) -> (i32, i32) {
    %c0_i32 = arith.constant 0 : i32
    %c0_i32_0 = arith.constant 0 : i32
    %c0_i32_1 = arith.constant 0 : i32
    return %c0_i32, %c0_i32_0 : i32, i32
  }
  func.func @transform_3(%arg0: i32) -> (i32, i32) {
    %c0_i32 = arith.constant 0 : i32
    %c0_i32_0 = arith.constant 0 : i32
    %c0_i32_1 = arith.constant 0 : i32
    return %c0_i32, %c0_i32_0 : i32, i32
  }
  func.func @transform_4(%arg0: i32) -> (i32, i32) {
    %c0_i32 = arith.constant 0 : i32
    %c0_i32_0 = arith.constant 0 : i32
    %c0_i32_1 = arith.constant 0 : i32
    return %c0_i32, %c0_i32_0 : i32, i32
  }
  func.func @transform_5(%arg0: i32) -> (i32, i32, i32) {
    %c0_i32 = arith.constant 0 : i32
    %c0_i32_0 = arith.constant 0 : i32
    %c0_i32_1 = arith.constant 0 : i32
    %c0_i32_2 = arith.constant 0 : i32
    return %c0_i32, %c0_i32_0, %c0_i32_1 : i32, i32, i32
  }
  func.func @transform_6(%arg0: i32) -> (i32, i32) {
    %c0_i32 = arith.constant 0 : i32
    %c0_i32_0 = arith.constant 0 : i32
    %c0_i32_1 = arith.constant 0 : i32
    return %c0_i32, %c0_i32_0 : i32, i32
  }
  func.func @transform_7(%arg0: i32) -> (i32, i32) {
    %c0_i32 = arith.constant 0 : i32
    %c0_i32_0 = arith.constant 0 : i32
    %c0_i32_1 = arith.constant 0 : i32
    return %c0_i32, %c0_i32_0 : i32, i32
  }
  func.func @transform_8(%arg0: i32) -> (i32, i32) {
    %c0_i32 = arith.constant 0 : i32
    %c0_i32_0 = arith.constant 0 : i32
    %c0_i32_1 = arith.constant 0 : i32
    return %c0_i32, %c0_i32_0 : i32, i32
  }
  func.func @transform_9(%arg0: i32) -> (i32, i32) {
    %c0_i32 = arith.constant 0 : i32
    %c0_i32_0 = arith.constant 0 : i32
    %c0_i32_1 = arith.constant 0 : i32
    return %c0_i32, %c0_i32_0 : i32, i32
  }
  func.func @transform_10(%arg0: i32) -> (i32, i32) {
    %c0_i32 = arith.constant 0 : i32
    %c0_i32_0 = arith.constant 0 : i32
    %c0_i32_1 = arith.constant 0 : i32
    return %c0_i32, %c0_i32_0 : i32, i32
  }
  func.func @transform_11(%arg0: i32) -> (i32, i32) {
    %c0_i32 = arith.constant 0 : i32
    %c0_i32_0 = arith.constant 0 : i32
    %c0_i32_1 = arith.constant 0 : i32
    return %c0_i32, %c0_i32_0 : i32, i32
  }
}

</mosaic_0001>

<bundles_post_ra>
// kernel: net_forward.1
= control target key start
LH: loop header
LB: loop body
LE: loop exit
PB: predicated region body
PF: predicated region fallthrough
CT: control target
= control target key end

     0   :  { %16 = vsyncpa [#allocation6], 0  ;;  %s4028_s0 = inlined_call_operand.vmem [shape: f32[64,128], index: 0, kind: input, shape index: {}]   ;;  %s4029_s1 = inlined_call_operand.vmem [shape: bf16[640,256], index: 1, kind: input, shape index: {}]   ;;  %s4030_s2 = inlined_call_operand.vmem [shape: f32[1,256], index: 2, kind: input, shape index: {}]   ;;  %s4031_s3 = inlined_call_operand.hbm [shape: bf16[640,256], index: 3, kind: input, shape index: {}]   ;;  %s4032_s4 = inlined_call_operand.vmem [shape: f32[1,256], index: 4, kind: input, shape index: {}]   ;;  %s4033_s5 = inlined_call_operand.hbm [shape: bf16[5,128,128], index: 5, kind: input, shape index: {}]   ;;  %s4034_s6 = inlined_call_operand.vmem [shape: f32[1,128], index: 6, kind: input, shape index: {}]   ;;  %s4035_s7 = inlined_call_operand.vmem [shape: bf16[128,128], index: 7, kind: input, shape index: {}]   ;;  %s4036_s8 = inlined_call_operand.vmem [shape: f32[1,128], index: 8, kind: input, shape index: {}]   ;;  %s4037_s9 = inlined_call_operand.vmem [shape: bf16[128,128], index: 9, kind: input, shape index: {}]   ;;  %s4038_s10 = inlined_call_operand.vmem [shape: f32[1,128], index: 10, kind: input, shape index: {}]   ;;  %s4039_s11 = inlined_call_operand.hbm [shape: f32[2,128], index: 11, kind: output, shape index: {}]  }
   0x1   :  { %17 = vsyncpa [#allocation9], 0 }
   0x2   :  { %18 = vsyncpa [#allocation7], 0  ;;  %s3372_s17 = smov [#allocation5]   ;;  %s3300_s21 = scalar_lea.hbm %s4031_s3, 10240 }
   0x3   :  { %s30_s18 = sshll.u32 %s3372_s17, 4  ;;  %p3301_p0 = scmp.ne.s32.totalorder %s4031_s3, %s3300_s21  ;;  %s31_s18 = int_to_ptr.vmem [resolvable:$true] %s30_s18 }
   0x4   :  { %p3304_p1 = scmp.lt.u32.totalorder %s3300_s21, %s4031_s3 }
   0x6   :  { %p3306_p2 = pnand %p3304_p1, %p3301_p0 }
   0x8   :  { %3309 = shalt.err (!%p3306_p2)
}
   0x9   :  { %s3310_s26 = scalar_lea.vmem %s31_s18, 10240  ;;  %p3315_p4 = scmp.lt.s32.totalorder %s31_s18, %s31_s18 }
   0xa   :  { %p3311_p3 = scmp.ne.s32.totalorder %s31_s18, %s3310_s26  ;;  %p3316_p5 = scmp.lt.s32.totalorder %s3310_s26, %s3310_s26 }
   0xc   :  { %p3317_p6 = por %p3316_p5, %p3315_p4 }
   0xe   :  { %p3318_p7 = pnand %p3317_p6, %p3311_p3 }
  0x10   :  { %3321 = shalt.err (!%p3318_p7)
}
  0x11   :  { %s3373_s27 = smov 128   ;;  %s3374_s28 = smov 8  }
  0x12   :  { %36 = dma.hbm_to_vmem [thread:$0]  %s4031_s3, 10240, %s31_s18, [#allocation6], %s3373_s27, %s3373_s27, %s3374_s28  }
  0x13   :  { %s3375_s12 = smov [#allocation8]   ;;  %s3322_s16 = scalar_lea.hbm %s4033_s5, 5120 }
  0x14   :  { %s44_s13 = sshll.u32 %s3375_s12, 4  ;;  %p3323_p8 = scmp.ne.s32.totalorder %s4033_s5, %s3322_s16  ;;  %s45_s13 = int_to_ptr.vmem [resolvable:$true] %s44_s13 }
  0x15   :  { %p3326_p9 = scmp.lt.u32.totalorder %s3322_s16, %s4033_s5 }
  0x17   :  { %p3328_p10 = pnand %p3326_p9, %p3323_p8 }
  0x19   :  { %3331 = shalt.err (!%p3328_p10)
}
  0x1a   :  { %s3332_s22 = scalar_lea.vmem %s45_s13, 5120  ;;  %p3337_p12 = scmp.lt.s32.totalorder %s45_s13, %s45_s13 }
  0x1b   :  { %p3333_p11 = scmp.ne.s32.totalorder %s45_s13, %s3332_s22  ;;  %p3338_p13 = scmp.lt.s32.totalorder %s3332_s22, %s3332_s22 }
  0x1d   :  { %p3339_p0 = por %p3338_p13, %p3337_p12 }
  0x1f   :  { %p3340_p1 = pnand %p3339_p0, %p3333_p11 }
  0x21   :  { %3343 = shalt.err (!%p3340_p1)
}
  0x22   :  { %s3376_s3 = smov 64   ;;  %s3377_s18 = smov 4  }
  0x23   :  { %50 = dma.hbm_to_vmem [thread:$0]  %s4033_s5, 5120, %s45_s13, [#allocation9], %s3376_s3, %s3376_s3, %s3377_s18  }
  0x24   :  { %3366 = dma.done.wait [#allocation6], 10240  }
  0x25   :  { %3367 = vsyncadd [#allocation6], 4294957056 }
  0x26   :  { %3368 = dma.done.wait [#allocation9], 5120  }
  0x27   :  { %3369 = vsyncadd [#allocation9], 4294962176  ;;  %v3004_v0 = vld [vmem:[%s4029_s1 + $0x104] ss:$8 sps:$4 sm:$0xff]   ;;  %v3006_v1 = vld [vmem:[%s4029_s1 + $0x100] ss:$8 sps:$4 sm:$0xff]  }
  0x28   :  { %773 = vmatprep.subr.bf16.mxu0 %v3004_v0  ;;  %v3007_v2 = vld [vmem:[%s4029_s1 + $0x114] ss:$8 sps:$4 sm:$0xff]   ;;  %v3009_v3 = vld [vmem:[%s4029_s1 + $0x110] ss:$8 sps:$4 sm:$0xff]   ;;  %v3010_v4 = vld [vmem:[%s4029_s1 + $0x124] ss:$8 sps:$4 sm:$0xff]  }
  0x29   :  { %774 = vmatpush1.bf16.msra.mxu0 %v3006_v1  ;;  %v3012_v5 = vld [vmem:[%s4029_s1 + $0x120] ss:$8 sps:$4 sm:$0xff]   ;;  %v3013_v6 = vld [vmem:[%s4029_s1 + $0x134] ss:$8 sps:$4 sm:$0xff]   ;;  %v3025_v7 = vld [vmem:[%s4029_s1 + $0x4] ss:$8 sps:$4 sm:$0xff]  }
  0x2a   :  { %775 = vmatprep.subr.bf16.mxu0 %v3007_v2  ;;  %v3015_v8 = vld [vmem:[%s4029_s1 + $0x130] ss:$8 sps:$4 sm:$0xff]   ;;  %v3016_v9 = vld [vmem:[%s4029_s1 + $0x144] ss:$8 sps:$4 sm:$0xff]   ;;  %v3029_v10 = vld [vmem:[%s4029_s1] ss:$8 sps:$4 sm:$0xff]   ;;  %700 = vmatprep.subr.bf16.mxu1 %v3025_v7 }
  0x2b   :  { %v3031_v11 = vld [vmem:[%s4029_s1 + $0x14] ss:$8 sps:$4 sm:$0xff]   ;;  %701 = vmatpush1.bf16.msra.mxu1 %v3029_v10  ;;  %v3018_v12 = vld [vmem:[%s4029_s1 + $0x140] ss:$8 sps:$4 sm:$0xff]   ;;  %v3035_v13 = vld [vmem:[%s4029_s1 + $0x10] ss:$8 sps:$4 sm:$0xff]  }
  0x2c   :  { %702 = vmatprep.subr.bf16.mxu1 %v3031_v11  ;;  %v3037_v14 = vld [vmem:[%s4029_s1 + $0x24] ss:$8 sps:$4 sm:$0xff]   ;;  %v3019_v15 = vld [vmem:[%s4029_s1 + $0x154] ss:$8 sps:$4 sm:$0xff]   ;;  %v3041_v16 = vld [vmem:[%s4029_s1 + $0x20] ss:$8 sps:$4 sm:$0xff]  }
  0x2d   :  { %776 = vmatpush1.bf16.msra.mxu0 %v3009_v3  ;;  %v3043_v17 = vld [vmem:[%s4029_s1 + $0x34] ss:$8 sps:$4 sm:$0xff]   ;;  %v3021_v18 = vld [vmem:[%s4029_s1 + $0x150] ss:$8 sps:$4 sm:$0xff]   ;;  %v3022_v19 = vld [vmem:[%s4029_s1 + $0x164] ss:$8 sps:$4 sm:$0xff]  }
  0x2e   :  { %777 = vmatprep.subr.bf16.mxu0 %v3010_v4  ;;  %v3047_v20 = vld [vmem:[%s4029_s1 + $0x30] ss:$8 sps:$4 sm:$0xff]   ;;  %v3049_v21 = vld [vmem:[%s4029_s1 + $0x44] ss:$8 sps:$4 sm:$0xff]   ;;  %v3024_v22 = vld [vmem:[%s4029_s1 + $0x160] ss:$8 sps:$4 sm:$0xff]  }
  0x2f   :  { %703 = vmatpush1.bf16.msra.mxu1 %v3035_v13  ;;  %v3027_v23 = vld [vmem:[%s4029_s1 + $0x174] ss:$8 sps:$4 sm:$0xff]   ;;  %v3053_v24 = vld [vmem:[%s4029_s1 + $0x40] ss:$8 sps:$4 sm:$0xff]   ;;  %v3030_v26 = vld [vmem:[%s4029_s1 + $0x170] ss:$8 sps:$4 sm:$0xff]  }
  0x30   :  { %704 = vmatprep.subr.bf16.mxu1 %v3037_v14  ;;  %v3055_v25 = vld [vmem:[%s4029_s1 + $0x54] ss:$8 sps:$4 sm:$0xff]   ;;  %v3033_v27 = vld [vmem:[%s4029_s1 + $0x184] ss:$8 sps:$4 sm:$0xff]   ;;  %v3059_v28 = vld [vmem:[%s4029_s1 + $0x50] ss:$8 sps:$4 sm:$0xff]  }
  0x31   :  { %778 = vmatpush1.bf16.msra.mxu0 %v3012_v5  ;;  %v3061_v29 = vld [vmem:[%s4029_s1 + $0x64] ss:$8 sps:$4 sm:$0xff]   ;;  %v3036_v30 = vld [vmem:[%s4029_s1 + $0x180] ss:$8 sps:$4 sm:$0xff]   ;;  %v3039_v31 = vld [vmem:[%s4029_s1 + $0x194] ss:$8 sps:$4 sm:$0xff]  }
  0x32   :  { %779 = vmatprep.subr.bf16.mxu0 %v3013_v6  ;;  %v3042_v32 = vld [vmem:[%s4029_s1 + $0x190] ss:$8 sps:$4 sm:$0xff]   ;;  %v3065_v33 = vld [vmem:[%s4029_s1 + $0x60] ss:$8 sps:$4 sm:$0xff]   ;;  %v3067_v36 = vld [vmem:[%s4029_s1 + $0x74] ss:$8 sps:$4 sm:$0xff]  }
  0x33   :  { %705 = vmatpush1.bf16.msra.mxu1 %v3041_v16  ;;  %v80_v34 = vld [vmem:[%s4028_s0 + $0x30] sm:$0xff]  ;;  %v81_v35 = vld [vmem:[%s4028_s0 + $0x38] sm:$0xff]  ;;  %v3582_v38 = vld [vmem:[%s4028_s0 + $0x20] sm:$0xff]  ;;  %vm953_vm0 = vcmask 1046528   ;;  %vm970_vm1 = vcmask 1045504   ;;  %vm3380_vm2 = vmmov 0  }
  0x34   :  { %706 = vmatprep.subr.bf16.mxu1 %v3043_v17  ;;  %v3577_v37 = vpack.c.bf16 %v81_v35, %v80_v34  ;;  %v3587_v39 = vld [vmem:[%s4028_s0 + $0x28] sm:$0xff]  ;;  %v3071_v41 = vld [vmem:[%s4029_s1 + $0x70] ss:$8 sps:$4 sm:$0xff]   ;;  %v3051_v44 = vld [vmem:[%s4029_s1 + $0x1b4] ss:$8 sps:$4 sm:$0xff]   ;;  %s3381_s28 = smov [#allocation10]  }
  0x35   :  { %780 = vmatpush1.bf16.msra.mxu0 %v3015_v8  ;;  %v3045_v40 = vld [vmem:[%s4029_s1 + $0x1a4] ss:$8 sps:$4 sm:$0xff]   ;;  %v3048_v43 = vld [vmem:[%s4029_s1 + $0x1a0] ss:$8 sps:$4 sm:$0xff]   ;;  %v3611_v46 = vld [vmem:[%s4028_s0 + $0x11] sm:$0xff]  ;;  %s2473_s29 = sshll.u32 %s3381_s28, 4  ;;  %s2474_s29 = int_to_ptr.vmem [resolvable:$true] %s2473_s29 }
  0x36   :  { %781 = vmatprep.subr.bf16.mxu0 %v3016_v9  ;;  %805 = vmatprep.mubr.bf16.mxu0 %v3577_v37  ;;  %v3073_v42 = vld [vmem:[%s4029_s1 + $0x84] ss:$8 sps:$4 sm:$0xff]   ;;  %v3077_v45 = vld [vmem:[%s4029_s1 + $0x80] ss:$8 sps:$4 sm:$0xff]   ;;  %v101_v47 = vld [vmem:[%s4028_s0 + $0x19] sm:$0x7f]  ;;  %p3349_p3 = scmp.lt.s32.totalorder %s2474_s29, %s2474_s29 }
  0x37   :  { %707 = vmatpush1.bf16.msra.mxu1 %v3047_v20  ;;  %v3079_v48 = vld [vmem:[%s4029_s1 + $0x94] ss:$8 sps:$4 sm:$0xff]   ;;  %103 = vst [vmem:[#allocation2 + $0x90] sm:$0x7f] %v101_v47  ;;  %v3622_v49 = vld [vmem:[%s4028_s0 + $0x1] sm:$0xff] }
  0x38   :  { %708 = vmatprep.subr.bf16.mxu1 %v3049_v21  ;;  %v97_v50 = vld [vmem:[%s4028_s0 + $0x9] sm:$0x7f]  ;;  %v3054_v51 = vld [vmem:[%s4029_s1 + $0x1b0] ss:$8 sps:$4 sm:$0xff]   ;;  %v3063_v57 = vld [vmem:[%s4029_s1 + $0x1d4] ss:$8 sps:$4 sm:$0xff]  }
  0x39   :  { %782 = vmatpush1.bf16.msra.mxu0 %v3018_v12  ;;  %99 = vst [vmem:[#allocation2 + $0x88] sm:$0x7f] %v97_v50  ;;  %v3057_v52 = vld [vmem:[%s4029_s1 + $0x1c4] ss:$8 sps:$4 sm:$0xff]   ;;  %v3084_v53 = vld [vmem:[%s4029_s1 + $0x90] ss:$8 sps:$4 sm:$0xff]  }
  0x3a   :  { %783 = vmatprep.subr.bf16.mxu0 %v3019_v15  ;;  %v3085_v54 = vld [vmem:[%s4029_s1 + $0xa4] ss:$8 sps:$4 sm:$0xff]   ;;  %v3060_v56 = vld [vmem:[%s4029_s1 + $0x1c0] ss:$8 sps:$4 sm:$0xff]   ;;  %v3091_v59 = vld [vmem:[%s4029_s1 + $0xb4] ss:$8 sps:$4 sm:$0xff]  }
  0x3b   :  { %709 = vmatpush1.bf16.msra.mxu1 %v3053_v24  ;;  %v121_v55 = vld [vmem:[%s4028_s0 + $0x9] sm:$0x7f]  ;;  %v3066_v60 = vld [vmem:[%s4029_s1 + $0x1d0] ss:$8 sps:$4 sm:$0xff]   ;;  %v3666_v63 = vld [vmem:[%s4028_s0 + $0x21] sm:$0xff] }
  0x3c   :  { %710 = vmatprep.subr.bf16.mxu1 %v3055_v25  ;;  %123 = vst [vmem:[#allocation2 + $0xe0] sm:$0x7f] %v121_v55  ;;  %v3090_v58 = vld [vmem:[%s4029_s1 + $0xa0] ss:$8 sps:$4 sm:$0xff]   ;;  %v3069_v61 = vld [vmem:[%s4029_s1 + $0x1e4] ss:$8 sps:$4 sm:$0xff]  }
  0x3d   :  { %784 = vmatpush1.bf16.msra.mxu0 %v3021_v18  ;;  %v3096_v62 = vld [vmem:[%s4029_s1 + $0xb0] ss:$8 sps:$4 sm:$0xff]   ;;  %v141_v0 = vld [vmem:[%s4028_s0 + $0x29] sm:$0x7f]  ;;  %v3075_v4 = vld [vmem:[%s4029_s1 + $0x1f4] ss:$8 sps:$4 sm:$0xff]  }
  0x3e   :  { %785 = vmatprep.subr.bf16.mxu0 %v3022_v19  ;;  %v3072_v1 = vld [vmem:[%s4029_s1 + $0x1e0] ss:$8 sps:$4 sm:$0xff]   ;;  %v3097_v2 = vld [vmem:[%s4029_s1 + $0xc4] ss:$8 sps:$4 sm:$0xff]   ;;  %143 = vst [vmem:[#allocation2 + $0x130] sm:$0x7f] %v141_v0 }
  0x3f   :  { %711 = vmatpush1.bf16.msra.mxu1 %v3059_v28  ;;  %v137_v3 = vld [vmem:[%s4028_s0 + $0x19] sm:$0x7f]  ;;  %v3102_v5 = vld [vmem:[%s4029_s1 + $0xc0] ss:$8 sps:$4 sm:$0xff]   ;;  %v72_v8 = vld [vmem:[%s4028_s0 + $0x10] sm:$0xff] }
  0x40   :  { %712 = vmatprep.subr.bf16.mxu1 %v3061_v29  ;;  %v3103_v6 = vld [vmem:[%s4029_s1 + $0xd4] ss:$8 sps:$4 sm:$0xff]   ;;  %139 = vst [vmem:[#allocation2 + $0x128] sm:$0x7f] %v137_v3  ;;  %v3078_v7 = vld [vmem:[%s4029_s1 + $0x1f0] ss:$8 sps:$4 sm:$0xff]  }
  0x41   :  { %786 = vmatpush1.bf16.msra.mxu0 %v3024_v22  ;;  %v73_v9 = vld [vmem:[%s4028_s0 + $0x18] sm:$0xff]  ;;  %v3701_v10 = vld [vmem:[%s4028_s0] sm:$0xff]  ;;  %v69_v12 = vld [vmem:[%s4028_s0 + $0x8] sm:$0xff]  ;;  %v3737_v22 = vpack.c.bf16 %v3587_v39, %v3582_v38  ;;  %v3378_v3 = vmov 0  }
  0x42   :  { %787 = vmatprep.subr.bf16.mxu0 %v3027_v23  ;;  %v3703_v11 = vpack.c.bf16 %v73_v9, %v72_v8  ;;  %v3083_v13 = vld [vmem:[%s4029_s1 + $0x204] ss:$8 sps:$4 sm:$0xff]   ;;  %v166_v14 = vld [vmem:[#allocation2 + $0x90] sm:$0xff]  ;;  %v125_v17 = vld [vmem:[%s4028_s0 + $0x19] sm:$0x7f] }
  0x43   :  { %713 = vmatpush1.bf16.msra.mxu1 %v3065_v33  ;;  %v85_v15 = vld [vmem:[%s4028_s0 + $0x9] sm:$0x7f]  ;;  %v3108_v19 = vld [vmem:[%s4029_s1 + $0xd0] ss:$8 sps:$4 sm:$0xff]   ;;  %127 = vst [vmem:[#allocation2 + $0xe8] sm:$0x7f] %v125_v17  ;;  %v196_v25 = vpack.c.bf16 %v166_v14, %v3611_v46 }
  0x44   :  { %714 = vmatprep.subr.bf16.mxu1 %v3067_v36  ;;  %732 = vmatprep.mubr.bf16.mxu1 %v3703_v11  ;;  %87 = vst [vmem:[#allocation2 + $0x48] sm:$0x7f] %v85_v15  ;;  %v105_v16 = vld [vmem:[%s4028_s0 + $0x29] sm:$0x7f]  ;;  %v3730_v20 = vld [vmem:[%s4028_s0 + $0x31] sm:$0xff] }
  0x45   :  { %788 = vmatpush1.bf16.msra.mxu0 %v3030_v26  ;;  %v133_v18 = vld [vmem:[%s4028_s0 + $0x9] sm:$0x7f]  ;;  %107 = vst [vmem:[#allocation2 + $0x98] sm:$0x7f] %v105_v16  ;;  %v145_v21 = vld [vmem:[%s4028_s0 + $0x39] sm:$0x7f] }
  0x46   :  { %789 = vmatprep.subr.bf16.mxu0 %v3033_v27  ;;  %135 = vst [vmem:[#allocation2 + $0x120] sm:$0x7f] %v133_v18  ;;  %v3109_v23 = vld [vmem:[%s4029_s1 + $0xe4] ss:$8 sps:$4 sm:$0xff]   ;;  %147 = vst [vmem:[#allocation2 + $0x138] sm:$0x7f] %v145_v21 }
  0x47   :  { %715 = vmatpush1.bf16.msra.mxu1 %v3071_v41  ;;  %v3081_v24 = vld [vmem:[%s4029_s1 + $0x200] ss:$8 sps:$4 sm:$0xff]   ;;  %v3089_v26 = vld [vmem:[%s4029_s1 + $0x214] ss:$8 sps:$4 sm:$0xff]   ;;  %v3087_v29 = vld [vmem:[%s4029_s1 + $0x210] ss:$8 sps:$4 sm:$0xff]   ;;  %v188_v41 = vpack.c.bf16 %v69_v12, %v3701_v10 }
  0x48   :  { %716 = vmatprep.subr.bf16.mxu1 %v3073_v42  ;;  %v3114_v27 = vld [vmem:[%s4029_s1 + $0xe0] ss:$8 sps:$4 sm:$0xff]   ;;  %v3115_v28 = vld [vmem:[%s4029_s1 + $0xf4] ss:$8 sps:$4 sm:$0xff]   ;;  %v3120_v34 = vld [vmem:[%s4029_s1 + $0xf0] ss:$8 sps:$4 sm:$0xff]  }
  0x49   :  { %790 = vmatpush1.bf16.msra.mxu0 %v3036_v30  ;;  %v165_v30 = vld [vmem:[#allocation2 + $0x88] sm:$0xff]  ;;  %v3126_v35 = vld [vmem:[#allocation5 + $0x4] ss:$8 sps:$4 sm:$0xff]   ;;  %v3111_v55 = vld [vmem:[%s4029_s1 + $0x250] ss:$8 sps:$4 sm:$0xff]  }
  0x4a   :  { %791 = vmatprep.subr.bf16.mxu0 %v3039_v31  ;;  %v3095_v31 = vld [vmem:[%s4029_s1 + $0x224] ss:$8 sps:$4 sm:$0xff]   ;;  %v3093_v33 = vld [vmem:[%s4029_s1 + $0x220] ss:$8 sps:$4 sm:$0xff]   ;;  %v195_v36 = vpack.c.bf16 %v165_v30, %v3622_v49  ;;  %v3101_v38 = vld [vmem:[%s4029_s1 + $0x234] ss:$8 sps:$4 sm:$0xff]  }
  0x4b   :  { %717 = vmatpush1.bf16.msra.mxu1 %v3077_v45  ;;  %v3129_v42 = vld [vmem:[#allocation5 + $0x14] ss:$8 sps:$4 sm:$0xff]   ;;  %v186_v45 = vld [vmem:[#allocation2 + $0x130] sm:$0xff]  ;;  %v3127_v47 = vld [vmem:[#allocation5 + $0x10] ss:$8 sps:$4 sm:$0xff]  }
  0x4c   :  { %718 = vmatprep.subr.bf16.mxu1 %v3079_v48  ;;  %v3132_v48 = vld [vmem:[#allocation5 + $0x24] ss:$8 sps:$4 sm:$0xff]   ;;  %v3105_v50 = vld [vmem:[%s4029_s1 + $0x240] ss:$8 sps:$4 sm:$0xff]   ;;  %v3121_v0 = vld [vmem:[%s4029_s1 + $0x270] ss:$8 sps:$4 sm:$0xff]  }
  0x4d   :  { %792 = vmatpush1.bf16.msra.mxu0 %v3042_v32  ;;  %v176_v32 = vld [vmem:[#allocation2 + $0xe0] sm:$0xff]  ;;  %v187_v9 = vld [vmem:[#allocation2 + $0x138] sm:$0xff] }
  0x4e   :  { %793 = vmatprep.subr.bf16.mxu0 %v3045_v40  ;;  %v201_v39 = vpack.c.bf16 %v176_v32, %v3622_v49  ;;  %v3124_v40 = vld [vmem:[#allocation5] ss:$8 sps:$4 sm:$0xff]   ;;  %v3139_v12 = vld [vmem:[#allocation5 + $0x50] ss:$8 sps:$4 sm:$0xff]   ;;  %v3150_v15 = vld [vmem:[#allocation5 + $0x84] ss:$8 sps:$4 sm:$0xff]  }
  0x4f   :  { %719 = vmatpush1.bf16.msra.mxu1 %v3084_v53  ;;  %v3130_v53 = vld [vmem:[#allocation5 + $0x20] ss:$8 sps:$4 sm:$0xff]   ;;  %v3145_v14 = vld [vmem:[#allocation5 + $0x70] ss:$8 sps:$4 sm:$0xff]   ;;  %v3153_v17 = vld [vmem:[#allocation5 + $0x94] ss:$8 sps:$4 sm:$0xff]  }
  0x50   :  { %720 = vmatprep.subr.bf16.mxu1 %v3085_v54  ;;  %v3135_v54 = vld [vmem:[#allocation5 + $0x34] ss:$8 sps:$4 sm:$0xff]   ;;  %v3136_v10 = vld [vmem:[#allocation5 + $0x40] ss:$8 sps:$4 sm:$0xff]   ;;  %v3151_v18 = vld [vmem:[#allocation5 + $0x90] ss:$8 sps:$4 sm:$0xff]  }
  0x51   :  { %794 = vmatpush1.bf16.msra.mxu0 %v3048_v43  ;;  %v3099_v43 = vld [vmem:[%s4029_s1 + $0x230] ss:$8 sps:$4 sm:$0xff]   ;;  %v3159_v21 = vld [vmem:[#allocation5 + $0xb4] ss:$8 sps:$4 sm:$0xff]   ;;  %v3169_v30 = vld [vmem:[#allocation5 + $0xf0] ss:$8 sps:$4 sm:$0xff]  }
  0x52   :  { %795 = vmatprep.subr.bf16.mxu0 %v3051_v44  ;;  %v3107_v44 = vld [vmem:[%s4029_s1 + $0x244] ss:$8 sps:$4 sm:$0xff]   ;;  %v3148_v16 = vld [vmem:[#allocation5 + $0x80] ss:$8 sps:$4 sm:$0xff]  }
  0x53   :  { %721 = vmatpush1.bf16.msra.mxu1 %v3090_v58  ;;  %v3133_v58 = vld [vmem:[#allocation5 + $0x30] ss:$8 sps:$4 sm:$0xff]  }
  0x54   :  { %722 = vmatprep.subr.bf16.mxu1 %v3091_v59  ;;  %v184_v59 = vld [vmem:[#allocation2 + $0x120] sm:$0xff] }
  0x55   :  { %796 = vmatpush1.bf16.msra.mxu0 %v3054_v51  ;;  %v3113_v51 = vld [vmem:[%s4029_s1 + $0x254] ss:$8 sps:$4 sm:$0xff]  }
  0x56   :  { %797 = vmatprep.subr.bf16.mxu0 %v3057_v52  ;;  %v206_v52 = vpack.c.bf16 %v186_v45, %v3666_v63 }
  0x57   :  { %723 = vmatpush1.bf16.msra.mxu1 %v3096_v62  ;;  %v3123_v62 = vld [vmem:[%s4029_s1 + $0x274] ss:$8 sps:$4 sm:$0xff]  }
  0x58   :  { %724 = vmatprep.subr.bf16.mxu1 %v3097_v2  ;;  %v204_v2 = vpack.c.bf16 %v184_v59, %v3622_v49 }
  0x59   :  { %798 = vmatpush1.bf16.msra.mxu0 %v3060_v56  ;;  %v185_v56 = vld [vmem:[#allocation2 + $0x128] sm:$0xff] }
  0x5a   :  { %799 = vmatprep.subr.bf16.mxu0 %v3063_v57  ;;  %v3119_v57 = vld [vmem:[%s4029_s1 + $0x264] ss:$8 sps:$4 sm:$0xff]  }
  0x5b   :  { %725 = vmatpush1.bf16.msra.mxu1 %v3102_v5  ;;  %v167_v5 = vld [vmem:[#allocation2 + $0x98] sm:$0xff] }
  0x5c   :  { %726 = vmatprep.subr.bf16.mxu1 %v3103_v6  ;;  %v197_v6 = vpack.c.bf16 %v167_v5, %v3666_v63  ;;  %v3144_v63 = vld [vmem:[#allocation5 + $0x64] ss:$8 sps:$4 sm:$0xff]  }
  0x5d   :  { %800 = vmatpush1.bf16.msra.mxu0 %v3066_v60  ;;  %v3117_v60 = vld [vmem:[%s4029_s1 + $0x260] ss:$8 sps:$4 sm:$0xff]  }
  0x5e   :  { %801 = vmatprep.subr.bf16.mxu0 %v3069_v61  ;;  %v205_v61 = vpack.c.bf16 %v185_v56, %v3611_v46 }
  0x5f   :  { %727 = vmatpush1.bf16.msra.mxu1 %v3108_v19  ;;  %v3156_v19 = vld [vmem:[#allocation5 + $0xa4] ss:$8 sps:$4 sm:$0xff]  }
  0x60   :  { %728 = vmatprep.subr.bf16.mxu1 %v3109_v23  ;;  %v3162_v23 = vld [vmem:[#allocation5 + $0xc4] ss:$8 sps:$4 sm:$0xff]  }
  0x61   :  { %802 = vmatpush1.bf16.msra.mxu0 %v3072_v1  ;;  %v157_v1 = vld [vmem:[#allocation2 + $0x48] sm:$0xff] }
  0x62   :  { %803 = vmatprep.subr.bf16.mxu0 %v3075_v4  ;;  %v192_v4 = vpack.c.bf16 %v157_v1, %v3622_v49  ;;  %v207_v49 = vpack.c.bf16 %v187_v9, %v3730_v20  ;;  %v3154_v20 = vld [vmem:[#allocation5 + $0xa0] ss:$8 sps:$4 sm:$0xff]  }
  0x63   :  { %729 = vmatpush1.bf16.msra.mxu1 %v3114_v27  ;;  %v3168_v27 = vld [vmem:[#allocation5 + $0xe4] ss:$8 sps:$4 sm:$0xff]  }
  0x64   :  { %730 = vmatprep.subr.bf16.mxu1 %v3115_v28  ;;  %v3166_v28 = vld [vmem:[#allocation5 + $0xe0] ss:$8 sps:$4 sm:$0xff]  }
  0x65   :  { %804 = vmatpush1.bf16.msra.mxu0 %v3078_v7  ;;  %v177_v7 = vld [vmem:[#allocation2 + $0xe8] sm:$0xff] }
  0x66   :  { %846 = vmatprep.subr.bf16.mxu0 %v3083_v13  ;;  %v202_v8 = vpack.c.bf16 %v177_v7, %v3611_v46  ;;  %v3142_v13 = vld [vmem:[#allocation5 + $0x60] ss:$8 sps:$4 sm:$0xff]   ;;  %v3147_v46 = vld [vmem:[#allocation5 + $0x74] ss:$8 sps:$4 sm:$0xff]  }
  0x67   :  { %731 = vmatpush1.bf16.msra.mxu1 %v3120_v34 }
  0x68   :  { %806 = vmatmul.mubr.bf16.vlgmr.msra.gmra.mrb[0].mxu0 %v3737_v22  ;;  %1515 = vmatprep.subr.bf16.mxu1 %v3126_v35  ;;  %v290_v35 = vlaneseq }
  0x69   :  { %847 = vmatpush1.bf16.msra.mxu0 %v3081_v24  ;;  %815 = vmatprep.mubr.bf16.mxu0 %v196_v25  ;;  %v3160_v24 = vld [vmem:[#allocation5 + $0xc0] ss:$8 sps:$4 sm:$0xff]   ;;  %v3165_v25 = vld [vmem:[#allocation5 + $0xd4] ss:$8 sps:$4 sm:$0xff]  }
  0x6a   :  { %848 = vmatprep.subr.bf16.mxu0 %v3089_v26  ;;  %733 = vmatmul.mubr.bf16.vlgmr.msra.gmra.mrb[0].mxu1 %v188_v41  ;;  %v3163_v26 = vld [vmem:[#allocation5 + $0xd0] ss:$8 sps:$4 sm:$0xff]  }
  0x6b   :  { %742 = vmatprep.mubr.bf16.mxu1 %v3577_v37  ;;  %1516 = vmatpush1.bf16.msra.mxu1 %v3124_v40 }
  0x6c   :  { %1517 = vmatprep.subr.bf16.mxu1 %v3129_v42 }
  0x6d   :  { %849 = vmatpush1.bf16.msra.mxu0 %v3087_v29  ;;  %v3171_v29 = vld [vmem:[#allocation5 + $0xf4] ss:$8 sps:$4 sm:$0xff]  }
  0x6e   :  { %850 = vmatprep.subr.bf16.mxu0 %v3095_v31  ;;  %v3174_v31 = vld [vmem:[#allocation5 + $0x104] ss:$8 sps:$4 sm:$0xff]  }
  0x6f   :  { %1518 = vmatpush1.bf16.msra.mxu1 %v3127_v47 }
  0x70   :  { %816 = vmatmul.mubr.bf16.gmra.mrb[4].mxu0 %v195_v36  ;;  %1519 = vmatprep.subr.bf16.mxu1 %v3132_v48 }
  0x71   :  { %851 = vmatpush1.bf16.msra.mxu0 %v3093_v33  ;;  %825 = vmatprep.mubr.bf16.mxu0 %v201_v39 }
  0x72   :  { %852 = vmatprep.subr.bf16.mxu0 %v3101_v38  ;;  %743 = vmatmul.mubr.bf16.gmra.mrb[4].mxu1 %v3737_v22  ;;  %v3818_v38 = vshrl.u32 %v290_v35, 7 }
  0x73   :  { %752 = vmatprep.mubr.bf16.mxu1 %v3737_v22  ;;  %1520 = vmatpush1.bf16.msra.mxu1 %v3130_v53  ;;  %v3157_v22 = vld [vmem:[#allocation5 + $0xb0] ss:$8 sps:$4 sm:$0xff]  }
  0x74   :  { %1521 = vmatprep.subr.bf16.mxu1 %v3135_v54  ;;  %v292_v42 = vsub.s32 0, %v3818_v38  ;;  %v296_v45 = vsub.s32 1, %v3818_v38 }
  0x75   :  { %853 = vmatpush1.bf16.msra.mxu0 %v3099_v43 }
  0x76   :  { %854 = vmatprep.subr.bf16.mxu0 %v3107_v44  ;;  %v288_v44 = vld [vmem:[%s4030_s2] sm:$0x3] }
  0x77   :  { %1522 = vmatpush1.bf16.msra.mxu1 %v3133_v58  ;;  %v3827_v47 = vrot.slane %v288_v44, %v292_v42  ;;  %v3831_v48 = vrot.slane %v288_v44, %v296_v45 }
  0x78   :  { %826 = vmatmul.mubr.bf16.gmra.mrb[8].mxu0 %v3577_v37 }
  0x79   :  { %855 = vmatpush1.bf16.msra.mxu0 %v3105_v50  ;;  %835 = vmatprep.mubr.bf16.mxu0 %v206_v52 }
  0x7a   :  { %856 = vmatprep.subr.bf16.mxu0 %v3113_v51  ;;  %753 = vmatmul.mubr.bf16.gmra.mrb[8].mxu1 %v3703_v11  ;;  %v3138_v11 = vld [vmem:[#allocation5 + $0x44] ss:$8 sps:$4 sm:$0xff]  }
  0x7b   :  { %762 = vmatprep.mubr.bf16.mxu1 %v204_v2  ;;  %1523 = vmatprep.subr.bf16.mxu1 %v3138_v11 }
  0x7c   :  { %1524 = vmatpush1.bf16.msra.mxu1 %v3136_v10 }
  0x7d   :  { %857 = vmatpush1.bf16.msra.mxu0 %v3111_v55 }
  0x7e   :  { %858 = vmatprep.subr.bf16.mxu0 %v3119_v57 }
  0x80   :  { %836 = vmatmul.mubr.bf16.gmra.mrb[12].mxu0 %v205_v61 }
  0x81   :  { %859 = vmatpush1.bf16.msra.mxu0 %v3117_v60  ;;  %878 = vmatprep.mubr.bf16.mxu0 %v3378_v3 }
  0x82   :  { %860 = vmatprep.subr.bf16.mxu0 %v3123_v62  ;;  %763 = vmatmul.mubr.bf16.gmra.mrb[12].mxu1 %v3577_v37  ;;  %v3141_v37 = vld [vmem:[#allocation5 + $0x54] ss:$8 sps:$4 sm:$0xff]  }
  0x83   :  { %1525 = vmatprep.subr.bf16.mxu1 %v3141_v37 }
  0x84   :  { %1526 = vmatpush1.bf16.msra.mxu1 %v3139_v12 }
  0x85   :  { %861 = vmatpush1.bf16.msra.mxu0 %v3121_v0  ;;  %1527 = vmatprep.subr.bf16.mxu1 %v3144_v63 }
  0x88   :  { %879 = vmatmul.mubr.bf16.vlgmr.msra.gmra.mrb[0].mxu0 %v192_v4  ;;  %1528 = vmatpush1.bf16.msra.mxu1 %v3142_v13 }
  0x89   :  { %888 = vmatprep.mubr.bf16.mxu0 %v3378_v3  ;;  %1529 = vmatprep.subr.bf16.mxu1 %v3147_v46 }
  0x8c   :  { %1530 = vmatpush1.bf16.msra.mxu1 %v3145_v14 }
  0x8d   :  { %1531 = vmatprep.subr.bf16.mxu1 %v3150_v15 }
  0x90   :  { %889 = vmatmul.mubr.bf16.gmra.mrb[4].mxu0 %v197_v6  ;;  %1532 = vmatpush1.bf16.msra.mxu1 %v3148_v16 }
  0x91   :  { %898 = vmatprep.mubr.bf16.mxu0 %v3378_v3  ;;  %1533 = vmatprep.subr.bf16.mxu1 %v3153_v17 }
  0x94   :  { %1534 = vmatpush1.bf16.msra.mxu1 %v3151_v18  ;;  %v3244_v18 = vld [vmem:[#allocation8] sm:$0xff]  }
  0x95   :  { %1535 = vmatprep.subr.bf16.mxu1 %v3156_v19 }
  0x98   :  { %899 = vmatmul.mubr.bf16.gmra.mrb[8].mxu0 %v202_v8  ;;  %1536 = vmatpush1.bf16.msra.mxu1 %v3154_v20  ;;  %v3379_v20 = vmov 0.0  }
  0x99   :  { %908 = vmatprep.mubr.bf16.mxu0 %v3378_v3  ;;  %1537 = vmatprep.subr.bf16.mxu1 %v3159_v21 }
  0x9a   :  { %2765 = vmatprep.subr.bf16.mxu0 %v3379_v20 }
  0x9b   :  { %2766 = vmatpush3.bf16.msra.mxu0 %v3244_v18 }
  0x9c   :  { %1538 = vmatpush1.bf16.msra.mxu1 %v3157_v22  ;;  %2767 = vmatprep.subr.bf16.mxu0 %v3379_v20 }
  0x9d   :  { %1539 = vmatprep.subr.bf16.mxu1 %v3162_v23 }
  0xa0   :  { %909 = vmatmul.mubr.bf16.gmra.mrb[12].mxu0 %v207_v49  ;;  %1540 = vmatpush1.bf16.msra.mxu1 %v3160_v24 }
  0xa1   :  { %1541 = vmatprep.subr.bf16.mxu1 %v3165_v25  ;;  %2781 = vmatprep.mubr.msk.bf16.mxu0 %vm3380_vm2, %v3379_v20 }
  0xa4   :  { %1542 = vmatpush1.bf16.msra.mxu1 %v3163_v26 }
  0xa5   :  { %1543 = vmatprep.subr.bf16.mxu1 %v3168_v27 }
  0xa8   :  { %1544 = vmatpush1.bf16.msra.mxu1 %v3166_v28 }
  0xa9   :  { %1545 = vmatprep.subr.bf16.mxu1 %v3171_v29 }
  0xac   :  { %1546 = vmatpush1.bf16.msra.mxu1 %v3169_v30 }
  0xad   :  { %1568 = vmatprep.subr.bf16.mxu1 %v3174_v31 }
 0x13d   :  { %v734_v32 = vpop.f32.mrb[0].mxu1 }
 0x13e   :  { %v736_v33 = vpop.f32.mrb[1].mxu1  ;;  %v735_v53 = vadd.f32 %v734_v32, %v3827_v47 }
 0x13f   :  { %v738_v34 = vpop.f32.mrb[2].mxu1  ;;  %v737_v55 = vadd.f32 %v736_v33, %v3831_v48 }
 0x140   :  { %v740_v36 = vpop.f32.mrb[3].mxu1  ;;  %v739_v57 = vadd.f32 %v738_v34, %v3827_v47 }
 0x141   :  { %v741_v60 = vadd.f32 %v740_v36, %v3831_v48 }
 0x145   :  { %v744_v39 = vpop.f32.mrb[4].mxu1 }
 0x146   :  { %v746_v40 = vpop.f32.mrb[5].mxu1  ;;  %v745_v7 = vadd.f32 %v744_v39, %v3827_v47 }
 0x147   :  { %v748_v41 = vpop.f32.mrb[6].mxu1  ;;  %v747_v9 = vadd.f32 %v746_v40, %v3831_v48 }
 0x148   :  { %v750_v43 = vpop.f32.mrb[7].mxu1  ;;  %v749_v10 = vadd.f32 %v748_v41, %v3827_v47 }
 0x149   :  { %v751_v12 = vadd.f32 %v750_v43, %v3831_v48 }
 0x14d   :  { %v754_v50 = vpop.f32.mrb[8].mxu1 }
 0x14e   :  { %v756_v51 = vpop.f32.mrb[9].mxu1  ;;  %v755_v16 = vadd.f32 %v754_v50, %v3827_v47 }
 0x14f   :  { %v758_v52 = vpop.f32.mrb[10].mxu1  ;;  %v757_v17 = vadd.f32 %v756_v51, %v3831_v48 }
 0x150   :  { %v760_v54 = vpop.f32.mrb[11].mxu1  ;;  %v759_v21 = vadd.f32 %v758_v52, %v3827_v47 }
 0x151   :  { %v761_v24 = vadd.f32 %v760_v54, %v3831_v48 }
 0x155   :  { %v764_v0 = vpop.f32.mrb[12].mxu1 }
 0x156   :  { %v766_v4 = vpop.f32.mrb[13].mxu1  ;;  %v765_v39 = vadd.f32 %v764_v0, %v3827_v47 }
 0x157   :  { %v768_v6 = vpop.f32.mrb[14].mxu1  ;;  %v767_v44 = vadd.f32 %v766_v4, %v3831_v48 }
 0x158   :  { %v770_v8 = vpop.f32.mrb[15].mxu1 }
 0x15b   :  { %v880_v56 = vpop.f32.mrb[0].mxu0 }
 0x15c   :  { %v2906_v58 = vadd.f32 %v880_v56, %v735_v53  ;;  %v882_v59 = vpop.f32.mrb[1].mxu0  ;;  %v771_v56 = vadd.f32 %v770_v8, %v3831_v48 }
 0x15d   :  { %v2908_v61 = vadd.f32 %v882_v59, %v737_v55  ;;  %v884_v62 = vpop.f32.mrb[2].mxu0  ;;  %v769_v55 = vadd.f32 %v768_v6, %v3827_v47 }
 0x15e   :  { %v2910_v1 = vadd.f32 %v884_v62, %v739_v57  ;;  %v886_v2 = vpop.f32.mrb[3].mxu0  ;;  %v919_v27 = vmax.f32 %v2906_v58, 0.0 }
 0x15f   :  { %v2912_v5 = vadd.f32 %v886_v2, %v741_v60  ;;  %v920_v31 = vmax.f32 %v2908_v61, 0.0 }
 0x160   :  { %v921_v34 = vmax.f32 %v2910_v1, 0.0 }
 0x161   :  { %v922_v40 = vmax.f32 %v2912_v5, 0.0 }
 0x163   :  { %v890_v49 = vpop.f32.mrb[4].mxu0 }
 0x164   :  { %v3840_v11 = vadd.f32 %v890_v49, %v745_v7  ;;  %v892_v37 = vpop.f32.mrb[5].mxu0 }
 0x165   :  { %v3843_v63 = vadd.f32 %v892_v37, %v747_v9  ;;  %v894_v13 = vpop.f32.mrb[6].mxu0 }
 0x166   :  { %v3845_v46 = vadd.f32 %v894_v13, %v749_v10  ;;  %v896_v14 = vpop.f32.mrb[7].mxu0  ;;  %v923_v54 = vmax.f32 %v3840_v11, 0.0 }
 0x167   :  { %v3847_v15 = vadd.f32 %v896_v14, %v751_v12  ;;  %v924_v59 = vmax.f32 %v3843_v63, 0.0 }
 0x168   :  { %v925_v60 = vmax.f32 %v3845_v46, 0.0 }
 0x169   :  { %v926_v48 = vmax.f32 %v3847_v15, 0.0 }
 0x16b   :  { %v900_v19 = vpop.f32.mrb[8].mxu0 }
 0x16c   :  { %v2922_v22 = vadd.f32 %v900_v19, %v755_v16  ;;  %v902_v23 = vpop.f32.mrb[9].mxu0 }
 0x16d   :  { %v2924_v25 = vadd.f32 %v902_v23, %v757_v17  ;;  %v904_v26 = vpop.f32.mrb[10].mxu0  ;;  %v3172_v23 = vld [vmem:[#allocation5 + $0x100] ss:$8 sps:$4 sm:$0xff]  }
 0x16e   :  { %v927_v28 = vmax.f32 %v2922_v22, 0.0  ;;  %v2926_v29 = vadd.f32 %v904_v26, %v759_v21  ;;  %v906_v30 = vpop.f32.mrb[11].mxu0 }
 0x16f   :  { %v928_v32 = vmax.f32 %v2924_v25, 0.0  ;;  %v2928_v33 = vadd.f32 %v906_v30, %v761_v24  ;;  %v3177_v25 = vld [vmem:[#allocation5 + $0x114] ss:$8 sps:$4 sm:$0xff]   ;;  %v3180_v30 = vld [vmem:[#allocation5 + $0x124] ss:$8 sps:$4 sm:$0xff]  }
 0x170   :  { %v935_v35 = vmax.f32 %v919_v27, %v927_v28  ;;  %v929_v36 = vmax.f32 %v2926_v29, 0.0  ;;  %v3175_v29 = vld [vmem:[#allocation5 + $0x110] ss:$8 sps:$4 sm:$0xff]  }
 0x171   :  { %v936_v41 = vmax.f32 %v920_v31, %v928_v32  ;;  %v930_v43 = vmax.f32 %v2928_v33, 0.0  ;;  %v3178_v31 = vld [vmem:[#allocation5 + $0x120] ss:$8 sps:$4 sm:$0xff]   ;;  %v3183_v33 = vld [vmem:[#allocation5 + $0x134] ss:$8 sps:$4 sm:$0xff]  }
 0x172   :  { %v937_v50 = vmax.f32 %v921_v34, %v929_v36  ;;  %v3186_v36 = vld [vmem:[#allocation5 + $0x144] ss:$8 sps:$4 sm:$0xff]  }
 0x173   :  { %v943_v51 = vmax.f32 %v935_v35, %v936_v41  ;;  %v938_v52 = vmax.f32 %v922_v40, %v930_v43  ;;  %v910_v53 = vpop.f32.mrb[12].mxu0  ;;  %v3181_v35 = vld [vmem:[#allocation5 + $0x130] ss:$8 sps:$4 sm:$0xff]   ;;  %v3189_v40 = vld [vmem:[#allocation5 + $0x154] ss:$8 sps:$4 sm:$0xff]  }
 0x174   :  { %v2930_v57 = vadd.f32 %v910_v53, %v765_v39  ;;  %v912_v58 = vpop.f32.mrb[13].mxu0  ;;  %v3184_v39 = vld [vmem:[#allocation5 + $0x140] ss:$8 sps:$4 sm:$0xff]   ;;  %v3187_v41 = vld [vmem:[#allocation5 + $0x150] ss:$8 sps:$4 sm:$0xff]  }
 0x175   :  { %v944_v61 = vmax.f32 %v937_v50, %v938_v52  ;;  %v2932_v62 = vadd.f32 %v912_v58, %v767_v44  ;;  %v914_v0 = vpop.f32.mrb[14].mxu0  ;;  %v954_v1 = vrot.slane %v943_v51, 1  ;;  %v971_v2 = vrot.slane %v943_v51, 2  ;;  %v3192_v43 = vld [vmem:[#allocation5 + $0x164] ss:$8 sps:$4 sm:$0xff]  }
 0x176   :  { %v931_v4 = vmax.f32 %v2930_v57, 0.0  ;;  %v2934_v5 = vadd.f32 %v914_v0, %v769_v55  ;;  %v916_v7 = vpop.f32.mrb[15].mxu0  ;;  %v3190_v44 = vld [vmem:[#allocation5 + $0x160] ss:$8 sps:$4 sm:$0xff]   ;;  %v3195_v50 = vld [vmem:[#allocation5 + $0x174] ss:$8 sps:$4 sm:$0xff]  }
 0x177   :  { %v955_v9 = vrot.slane %v944_v61, 1  ;;  %v972_v49 = vrot.slane %v944_v61, 2  ;;  %v932_v10 = vmax.f32 %v2932_v62, 0.0  ;;  %v2936_v47 = vadd.f32 %v916_v7, %v771_v56  ;;  %v3198_v52 = vld [vmem:[#allocation5 + $0x184] ss:$8 sps:$4 sm:$0xff]  }
 0x178   :  { %v939_v6 = vmax.f32 %v923_v54, %v931_v4  ;;  %v933_v8 = vmax.f32 %v2934_v5, 0.0  ;;  %v1013_v11 = vpack.c.bf16 %v944_v61, %v943_v51  ;;  %v3193_v51 = vld [vmem:[#allocation5 + $0x170] ss:$8 sps:$4 sm:$0xff]   ;;  %v3196_v53 = vld [vmem:[#allocation5 + $0x180] ss:$8 sps:$4 sm:$0xff]  }
 0x179   :  { %v3864_v37 = vsel %vm953_vm0, %v954_v1, %v955_v9  ;;  %960 = vst [vmem:[#allocation3 + $0x38] sm:$0x7f] %v955_v9  ;;  %v3867_v12 = vsel %vm970_vm1, %v971_v2, %v972_v49  ;;  %977 = vst [vmem:[#allocation3 + $0x48] sm:$0x3f] %v972_v49  ;;  %v940_v63 = vmax.f32 %v924_v59, %v932_v10  ;;  %v934_v13 = vmax.f32 %v2936_v47, 0.0 }
 0x17a   :  { %981 = vst [vmem:[#allocation3 + $0x80] sm:$0x7f] %v955_v9  ;;  %985 = vst [vmem:[#allocation3 + $0x90] sm:$0x3f] %v972_v49  ;;  %v941_v46 = vmax.f32 %v925_v60, %v933_v8  ;;  %v3201_v54 = vld [vmem:[#allocation5 + $0x194] ss:$8 sps:$4 sm:$0xff]  }
 0x17b   :  { %v945_v14 = vmax.f32 %v939_v6, %v940_v63  ;;  %v942_v16 = vmax.f32 %v926_v48, %v934_v13  ;;  %v3199_v55 = vld [vmem:[#allocation5 + $0x190] ss:$8 sps:$4 sm:$0xff]   ;;  %v3204_v56 = vld [vmem:[#allocation5 + $0x1a4] ss:$8 sps:$4 sm:$0xff]   ;;  %v3202_v57 = vld [vmem:[#allocation5 + $0x1a0] ss:$8 sps:$4 sm:$0xff]  }
 0x17c   :  { %v3207_v58 = vld [vmem:[#allocation5 + $0x1b4] ss:$8 sps:$4 sm:$0xff]   ;;  %v3205_v59 = vld [vmem:[#allocation5 + $0x1b0] ss:$8 sps:$4 sm:$0xff]   ;;  %v3210_v60 = vld [vmem:[#allocation5 + $0x1c4] ss:$8 sps:$4 sm:$0xff]  }
 0x17d   :  { %v946_v17 = vmax.f32 %v941_v46, %v942_v16  ;;  %v963_v15 = vrot.slane %v945_v14, 1  ;;  %v986_v18 = vrot.slane %v945_v14, 2  ;;  %v3208_v61 = vld [vmem:[#allocation5 + $0x1c0] ss:$8 sps:$4 sm:$0xff]   ;;  %v3213_v62 = vld [vmem:[#allocation5 + $0x1d4] ss:$8 sps:$4 sm:$0xff]  }
 0x17e   :  { %v3211_v0 = vld [vmem:[#allocation5 + $0x1d0] ss:$8 sps:$4 sm:$0xff]   ;;  %v3216_v1 = vld [vmem:[#allocation5 + $0x1e4] ss:$8 sps:$4 sm:$0xff]   ;;  %v3214_v2 = vld [vmem:[#allocation5 + $0x1e0] ss:$8 sps:$4 sm:$0xff]  }
 0x17f   :  { %v964_v19 = vrot.slane %v946_v17, 1  ;;  %v987_v21 = vrot.slane %v946_v17, 2  ;;  %v1014_v22 = vpack.c.bf16 %v946_v17, %v945_v14  ;;  %v3219_v4 = vld [vmem:[#allocation5 + $0x1f4] ss:$8 sps:$4 sm:$0xff]   ;;  %v3217_v5 = vld [vmem:[#allocation5 + $0x1f0] ss:$8 sps:$4 sm:$0xff]  }
 0x180   :  { %v3222_v7 = vld [vmem:[#allocation5 + $0x204] ss:$8 sps:$4 sm:$0xff]   ;;  %v3220_v10 = vld [vmem:[#allocation5 + $0x200] ss:$8 sps:$4 sm:$0xff]   ;;  %v3225_v48 = vld [vmem:[#allocation5 + $0x214] ss:$8 sps:$4 sm:$0xff]  }
 0x181   :  { %v1009_v24 = vld [vmem:[#allocation3 + $0x80] sm:$0xff]  ;;  %v3870_v26 = vsel %vm953_vm0, %v963_v15, %v964_v19  ;;  %969 = vst [vmem:[#allocation3 + $0x40] sm:$0x7f] %v964_v19  ;;  %983 = vst [vmem:[#allocation3 + $0x88] sm:$0x7f] %v964_v19  ;;  %v3873_v27 = vsel %vm970_vm1, %v986_v18, %v987_v21  ;;  %1547 = vmatprep.mubr.bf16.mxu1 %v1014_v22  ;;  %v1000_v9 = vld [vmem:[#allocation3 + $0x38] sm:$0xff] }
 0x182   :  { %992 = vst [vmem:[#allocation3 + $0x98] sm:$0x3f] %v987_v21  ;;  %v1019_v28 = vpack.c.bf16 %v1009_v24, %v3864_v37  ;;  %1548 = vmatmul.mubr.bf16.vlgmr.msra.gmra.mrb[16].mxu1 %v1013_v11  ;;  %v1011_v49 = vld [vmem:[#allocation3 + $0x90] sm:$0xff]  ;;  %v1015_v47 = vpack.c.bf16 %v1000_v9, %v3864_v37  ;;  %v3223_v8 = vld [vmem:[#allocation5 + $0x210] ss:$8 sps:$4 sm:$0xff]  }
 0x183   :  { %1569 = vmatpush1.bf16.msra.mxu1 %v3172_v23  ;;  %v1021_v6 = vpack.c.bf16 %v1011_v49, %v3867_v12  ;;  %v3228_v11 = vld [vmem:[#allocation5 + $0x224] ss:$8 sps:$4 sm:$0xff]   ;;  %v3226_v13 = vld [vmem:[#allocation5 + $0x220] ss:$8 sps:$4 sm:$0xff]   ;;  %v3231_v14 = vld [vmem:[#allocation5 + $0x234] ss:$8 sps:$4 sm:$0xff]  }
 0x184   :  { %1557 = vmatprep.mubr.bf16.mxu1 %v1019_v28  ;;  %1570 = vmatprep.subr.bf16.mxu1 %v3177_v25  ;;  %v3229_v37 = vld [vmem:[#allocation5 + $0x230] ss:$8 sps:$4 sm:$0xff]   ;;  %v3234_v16 = vld [vmem:[#allocation5 + $0x244] ss:$8 sps:$4 sm:$0xff]   ;;  %v3232_v17 = vld [vmem:[#allocation5 + $0x240] ss:$8 sps:$4 sm:$0xff]  }
 0x185   :  { %v3237_v15 = vld [vmem:[#allocation5 + $0x254] ss:$8 sps:$4 sm:$0xff]   ;;  %v3235_v18 = vld [vmem:[#allocation5 + $0x250] ss:$8 sps:$4 sm:$0xff]   ;;  %v3240_v19 = vld [vmem:[#allocation5 + $0x264] ss:$8 sps:$4 sm:$0xff]  }
 0x186   :  { %v3238_v21 = vld [vmem:[#allocation5 + $0x260] ss:$8 sps:$4 sm:$0xff]   ;;  %v3241_v23 = vld [vmem:[#allocation5 + $0x270] ss:$8 sps:$4 sm:$0xff]  }
 0x187   :  { %1571 = vmatpush1.bf16.msra.mxu1 %v3175_v29  ;;  %v1002_v24 = vld [vmem:[#allocation3 + $0x48] sm:$0xff]  ;;  %v3245_v29 = vld [vmem:[#allocation8 + $0x8] sm:$0xff]  }
 0x188   :  { %1572 = vmatprep.subr.bf16.mxu1 %v3180_v30  ;;  %v1001_v32 = vld [vmem:[#allocation3 + $0x40] sm:$0xff]  ;;  %v1010_v63 = vld [vmem:[#allocation3 + $0x88] sm:$0xff]  ;;  %v1017_v25 = vpack.c.bf16 %v1002_v24, %v3867_v12  ;;  %2768 = vmatpush3.bf16.msra.mxu0 %v3245_v29  ;;  %v3248_v12 = vld [vmem:[#allocation8 + $0x20] sm:$0xff]  }
 0x189   :  { %v1016_v34 = vpack.c.bf16 %v1001_v32, %v3870_v26  ;;  %v1020_v46 = vpack.c.bf16 %v1010_v63, %v3870_v26  ;;  %v1012_v26 = vld [vmem:[#allocation3 + $0x98] sm:$0xff]  ;;  %2769 = vmatprep.subr.bf16.mxu0 %v3379_v20  ;;  %v3246_v30 = vld [vmem:[#allocation8 + $0x10] sm:$0xff]   ;;  %v3251_v32 = vld [vmem:[#allocation8 + $0x38] sm:$0xff]  }
 0x18a   :  { %1558 = vmatmul.mubr.bf16.gmra.mrb[20].mxu1 %v1014_v22  ;;  %v3243_v22 = vld [vmem:[#allocation5 + $0x274] ss:$8 sps:$4 sm:$0xff]   ;;  %v1022_v28 = vpack.c.bf16 %v1012_v26, %v3873_v27  ;;  %v3261_v24 = vld [vmem:[#allocation8 + $0x88] sm:$0xff]  }
 0x18b   :  { %1573 = vmatpush1.bf16.msra.mxu1 %v3178_v31  ;;  %1600 = vmatprep.mubr.bf16.mxu1 %v1016_v34  ;;  %v3247_v31 = vld [vmem:[#allocation8 + $0x18] sm:$0xff]   ;;  %v3250_v27 = vld [vmem:[#allocation8 + $0x30] sm:$0xff]   ;;  %v3265_v29 = vld [vmem:[#allocation8 + $0xa8] sm:$0xff]  }
 0x18c   :  { %1574 = vmatprep.subr.bf16.mxu1 %v3183_v33  ;;  %2770 = vmatpush3.bf16.msra.mxu0 %v3246_v30  ;;  %v1103_v33 = vld [vmem:[%s4032_s4] sm:$0x3]  ;;  %v3263_v26 = vld [vmem:[#allocation8 + $0x98] sm:$0xff]  }
 0x18d   :  { %2771 = vmatprep.subr.bf16.mxu0 %v3379_v20  ;;  %v3254_v63 = vld [vmem:[#allocation8 + $0x50] sm:$0xff]  }
 0x18e   :  { %v3266_v30 = vld [vmem:[#allocation8 + $0xb0] sm:$0xff]  }
 0x18f   :  { %1575 = vmatpush1.bf16.msra.mxu1 %v3181_v35 }
 0x190   :  { %1576 = vmatprep.subr.bf16.mxu1 %v3186_v36  ;;  %2772 = vmatpush3.bf16.msra.mxu0 %v3247_v31  ;;  %v3267_v31 = vld [vmem:[#allocation8 + $0xb8] sm:$0xff]  }
 0x191   :  { %2773 = vmatprep.subr.bf16.mxu0 %v3379_v20 }
 0x193   :  { %1577 = vmatpush1.bf16.msra.mxu1 %v3184_v39  ;;  %v1108_v39 = vrot.slane %v1103_v33, %v292_v42 }
 0x194   :  { %1578 = vmatprep.subr.bf16.mxu1 %v3189_v40  ;;  %2774 = vmatpush3.bf16.msra.mxu0 %v3248_v12 }
 0x195   :  { %2775 = vmatprep.subr.bf16.mxu0 %v3379_v20 }
 0x197   :  { %1579 = vmatpush1.bf16.msra.mxu1 %v3187_v41  ;;  %v1112_v41 = vrot.slane %v1103_v33, %v296_v45  ;;  %v3270_v33 = vld [vmem:[#allocation8 + $0xd0] sm:$0xff]  }
 0x198   :  { %1580 = vmatprep.subr.bf16.mxu1 %v3192_v43 }
 0x19b   :  { %1581 = vmatpush1.bf16.msra.mxu1 %v3190_v44 }
 0x19c   :  { %1582 = vmatprep.subr.bf16.mxu1 %v3195_v50 }
 0x19f   :  { %1583 = vmatpush1.bf16.msra.mxu1 %v3193_v51 }
 0x1a0   :  { %1584 = vmatprep.subr.bf16.mxu1 %v3198_v52 }
 0x1a3   :  { %1585 = vmatpush1.bf16.msra.mxu1 %v3196_v53 }
 0x1a4   :  { %1586 = vmatprep.subr.bf16.mxu1 %v3201_v54 }
 0x1a7   :  { %1587 = vmatpush1.bf16.msra.mxu1 %v3199_v55 }
 0x1a8   :  { %1588 = vmatprep.subr.bf16.mxu1 %v3204_v56 }
 0x1ab   :  { %1589 = vmatpush1.bf16.msra.mxu1 %v3202_v57 }
 0x1ac   :  { %1590 = vmatprep.subr.bf16.mxu1 %v3207_v58 }
 0x1af   :  { %1591 = vmatpush1.bf16.msra.mxu1 %v3205_v59 }
 0x1b0   :  { %1592 = vmatprep.subr.bf16.mxu1 %v3210_v60 }
 0x1b3   :  { %1593 = vmatpush1.bf16.msra.mxu1 %v3208_v61 }
 0x1b4   :  { %1594 = vmatprep.subr.bf16.mxu1 %v3213_v62 }
 0x1b7   :  { %1595 = vmatpush1.bf16.msra.mxu1 %v3211_v0 }
 0x1b8   :  { %1596 = vmatprep.subr.bf16.mxu1 %v3216_v1 }
 0x1bb   :  { %1597 = vmatpush1.bf16.msra.mxu1 %v3214_v2 }
 0x1bc   :  { %1598 = vmatprep.subr.bf16.mxu1 %v3219_v4 }
 0x1bf   :  { %1599 = vmatpush1.bf16.msra.mxu1 %v3217_v5 }
 0x1c0   :  { %1621 = vmatprep.subr.bf16.mxu1 %v3222_v7 }
 0x1c2   :  { %1601 = vmatmul.mubr.bf16.vlgmr.msra.gmra.mrb[16].mxu1 %v1015_v47  ;;  %v3252_v47 = vld [vmem:[#allocation8 + $0x40] sm:$0xff]  }
 0x1c3   :  { %1610 = vmatprep.mubr.bf16.mxu1 %v1021_v6  ;;  %1622 = vmatpush1.bf16.msra.mxu1 %v3220_v10  ;;  %v3284_v6 = vld [vmem:[%s4035_s7] sm:$0xff]  }
 0x1c4   :  { %1623 = vmatprep.subr.bf16.mxu1 %v3225_v48 }
 0x1c7   :  { %1624 = vmatpush1.bf16.msra.mxu1 %v3223_v8  ;;  %v3253_v8 = vld [vmem:[#allocation8 + $0x48] sm:$0xff]  }
 0x1c8   :  { %1625 = vmatprep.subr.bf16.mxu1 %v3228_v11  ;;  %v3285_v11 = vld [vmem:[%s4035_s7 + $0x8] sm:$0xff]  }
 0x1ca   :  { %1611 = vmatmul.mubr.bf16.gmra.mrb[20].mxu1 %v1020_v46  ;;  %v3255_v46 = vld [vmem:[#allocation8 + $0x58] sm:$0xff]  }
 0x1cb   :  { %1626 = vmatpush1.bf16.msra.mxu1 %v3226_v13  ;;  %1653 = vmatprep.mubr.bf16.mxu1 %v3378_v3  ;;  %v3286_v13 = vld [vmem:[%s4035_s7 + $0x10] sm:$0xff]  }
 0x1cc   :  { %1627 = vmatprep.subr.bf16.mxu1 %v3231_v14  ;;  %v3287_v14 = vld [vmem:[%s4035_s7 + $0x18] sm:$0xff]  }
 0x1cf   :  { %1628 = vmatpush1.bf16.msra.mxu1 %v3229_v37  ;;  %v3256_v37 = vld [vmem:[#allocation8 + $0x60] sm:$0xff]  }
 0x1d0   :  { %1629 = vmatprep.subr.bf16.mxu1 %v3234_v16  ;;  %v3288_v16 = vld [vmem:[%s4035_s7 + $0x20] sm:$0xff]  }
 0x1d3   :  { %1630 = vmatpush1.bf16.msra.mxu1 %v3232_v17  ;;  %v3257_v17 = vld [vmem:[#allocation8 + $0x68] sm:$0xff]  }
 0x1d4   :  { %1631 = vmatprep.subr.bf16.mxu1 %v3237_v15  ;;  %v3289_v15 = vld [vmem:[%s4035_s7 + $0x28] sm:$0xff]  }
 0x1d7   :  { %1632 = vmatpush1.bf16.msra.mxu1 %v3235_v18  ;;  %v3258_v18 = vld [vmem:[#allocation8 + $0x70] sm:$0xff]  }
 0x1d8   :  { %1633 = vmatprep.subr.bf16.mxu1 %v3240_v19  ;;  %v3259_v19 = vld [vmem:[#allocation8 + $0x78] sm:$0xff]  }
 0x1db   :  { %1634 = vmatpush1.bf16.msra.mxu1 %v3238_v21 }
 0x1dc   :  { %1635 = vmatprep.subr.bf16.mxu1 %v3243_v22  ;;  %v3260_v22 = vld [vmem:[#allocation8 + $0x80] sm:$0xff]  }
 0x1df   :  { %1636 = vmatpush1.bf16.msra.mxu1 %v3241_v23 }
 0x1e0   :  { %2865 = vmatprep.subr.bf16.mxu1 %v3379_v20 }
 0x1e2   :  { %1654 = vmatmul.mubr.bf16.vlgmr.msra.gmra.mrb[16].mxu1 %v1017_v25  ;;  %v3262_v25 = vld [vmem:[#allocation8 + $0x90] sm:$0xff]  }
 0x1e3   :  { %1663 = vmatprep.mubr.bf16.mxu1 %v3378_v3  ;;  %v3249_v3 = vld [vmem:[#allocation8 + $0x28] sm:$0xff]   ;;  %2866 = vmatpush3.bf16.msra.mxu1 %v3284_v6  ;;  %v2684_v6 = vld [vmem:[%s4036_s8] ss:$0 sm:$0xff]  ;;  %s3344_s8 = scalar_lea.vmem %s2474_s29, 32 }
 0x1e4   :  { %2776 = vmatpush3.bf16.msra.mxu0 %v3249_v3  ;;  %2867 = vmatprep.subr.bf16.mxu1 %v3379_v20  ;;  %v3268_v3 = vld [vmem:[#allocation8 + $0xc0] sm:$0xff]   ;;  %p3345_p2 = scmp.ne.s32.totalorder %s2474_s29, %s3344_s8  ;;  %p3350_p4 = scmp.lt.s32.totalorder %s3344_s8, %s3344_s8 }
 0x1e5   :  { %2777 = vmatprep.subr.bf16.mxu0 %v3379_v20 }
 0x1e6   :  { %p3351_p5 = por %p3350_p4, %p3349_p3 }
 0x1e7   :  { %2868 = vmatpush3.bf16.msra.mxu1 %v3285_v11 }
 0x1e8   :  { %2778 = vmatpush3.bf16.msra.mxu0 %v3250_v27  ;;  %2869 = vmatprep.subr.bf16.mxu1 %v3379_v20  ;;  %p3352_p6 = pnand %p3351_p5, %p3345_p2 }
 0x1e9   :  { %2779 = vmatprep.subr.bf16.mxu0 %v3379_v20 }
 0x1ea   :  { %1664 = vmatmul.mubr.bf16.gmra.mrb[20].mxu1 %v1022_v28  ;;  %v3264_v28 = vld [vmem:[#allocation8 + $0xa0] sm:$0xff]  }
 0x1eb   :  { %2881 = vmatprep.mubr.msk.bf16.mxu1 %vm3380_vm2, %v3379_v20  ;;  %2870 = vmatpush3.bf16.msra.mxu1 %v3286_v13 }
 0x1ec   :  { %2780 = vmatpush3.bf16.msra.mxu0 %v3251_v32  ;;  %2871 = vmatprep.subr.bf16.mxu1 %v3379_v20  ;;  %v3269_v32 = vld [vmem:[#allocation8 + $0xc8] sm:$0xff]  }
 0x1ed   :  { %2785 = vmatprep.subr.bf16.mxu0 %v3379_v20 }
 0x1ef   :  { %2872 = vmatpush3.bf16.msra.mxu1 %v3287_v14 }
 0x1f0   :  { %2873 = vmatprep.subr.bf16.mxu1 %v3379_v20 }
 0x1f3   :  { %2874 = vmatpush3.bf16.msra.mxu1 %v3288_v16 }
 0x1f4   :  { %2875 = vmatprep.subr.bf16.mxu1 %v3379_v20 }
 0x1f7   :  { %2876 = vmatpush3.bf16.msra.mxu1 %v3289_v15 }
 0x1f8   :  { %2877 = vmatprep.subr.bf16.mxu1 %v3379_v20 }
 0x2b5   :  { %v1655_v34 = vpop.f32.mrb[16].mxu1 }
 0x2b6   :  { %v1657_v35 = vpop.f32.mrb[17].mxu1  ;;  %v2937_v43 = vadd.f32 %v1655_v34, %v1108_v39  ;;  %v3271_v34 = vld [vmem:[#allocation8 + $0xd8] sm:$0xff]  }
 0x2b7   :  { %v1659_v36 = vpop.f32.mrb[18].mxu1  ;;  %v2938_v44 = vadd.f32 %v1657_v35, %v1112_v41  ;;  %v3272_v35 = vld [vmem:[#allocation8 + $0xe0] sm:$0xff]  }
 0x2b8   :  { %v1661_v40 = vpop.f32.mrb[19].mxu1  ;;  %v2939_v51 = vadd.f32 %v1659_v36, %v1108_v39  ;;  %v1674_v57 = vmax.f32 %v2937_v43, 0.0  ;;  %v3273_v36 = vld [vmem:[#allocation8 + $0xe8] sm:$0xff]   ;;  %v3276_v43 = vld [vmem:[#allocation8 + $0x100] sm:$0xff]  }
 0x2b9   :  { %v2940_v54 = vadd.f32 %v1661_v40, %v1112_v41  ;;  %v1675_v61 = vmax.f32 %v2938_v44, 0.0  ;;  %v3275_v40 = vld [vmem:[#allocation8 + $0xf8] sm:$0xff]  }
 0x2ba   :  { %v1676_v0 = vmax.f32 %v2939_v51, 0.0  ;;  %v3278_v51 = vld [vmem:[#allocation8 + $0x110] sm:$0xff]  }
 0x2bb   :  { %v1677_v45 = vmax.f32 %v2940_v54, 0.0  ;;  %v3281_v54 = vld [vmem:[#allocation8 + $0x128] sm:$0xff]  }
 0x2bd   :  { %v1665_v50 = vpop.f32.mrb[20].mxu1 }
 0x2be   :  { %v2941_v52 = vadd.f32 %v1665_v50, %v1108_v39  ;;  %v1667_v53 = vpop.f32.mrb[21].mxu1  ;;  %v3277_v50 = vld [vmem:[#allocation8 + $0x108] sm:$0xff]  }
 0x2bf   :  { %v2942_v55 = vadd.f32 %v1667_v53, %v1112_v41  ;;  %v1669_v56 = vpop.f32.mrb[22].mxu1  ;;  %v3280_v53 = vld [vmem:[#allocation8 + $0x120] sm:$0xff]  }
 0x2c0   :  { %v1678_v58 = vmax.f32 %v2941_v52, 0.0  ;;  %v2943_v59 = vadd.f32 %v1669_v56, %v1108_v39  ;;  %v1671_v60 = vpop.f32.mrb[23].mxu1  ;;  %v3274_v39 = vld [vmem:[#allocation8 + $0xf0] sm:$0xff]   ;;  %v3279_v52 = vld [vmem:[#allocation8 + $0x118] sm:$0xff]  }
 0x2c1   :  { %v1679_v62 = vmax.f32 %v2942_v55, 0.0  ;;  %v2944_v42 = vadd.f32 %v1671_v60, %v1112_v41  ;;  %v3282_v55 = vld [vmem:[#allocation8 + $0x130] sm:$0xff]   ;;  %v3283_v56 = vld [vmem:[#allocation8 + $0x138] sm:$0xff]   ;;  %v3291_v60 = vld [vmem:[%s4035_s7 + $0x38] sm:$0xff]  }
 0x2c2   :  { %v1682_v1 = vmax.f32 %v1674_v57, %v1678_v58  ;;  %v1680_v38 = vmax.f32 %v2943_v59, 0.0  ;;  %v3290_v59 = vld [vmem:[%s4035_s7 + $0x30] sm:$0xff]  }
 0x2c3   :  { %v1683_v2 = vmax.f32 %v1675_v61, %v1679_v62  ;;  %v1681_v4 = vmax.f32 %v2944_v42, 0.0  ;;  %2878 = vmatpush3.bf16.msra.mxu1 %v3290_v59  ;;  %v2651_v61 = vld [vmem:[%s4034_s6] ss:$0 sm:$0xff] }
 0x2c4   :  { %v1684_v5 = vmax.f32 %v1676_v0, %v1680_v38  ;;  %2879 = vmatprep.subr.bf16.mxu1 %v3379_v20 }
 0x2c5   :  { %v1686_v7 = vmax.f32 %v1682_v1, %v1683_v2  ;;  %v1685_v9 = vmax.f32 %v1677_v45, %v1681_v4  ;;  %v3292_v2 = vld [vmem:[%s4037_s9] sm:$0xff]  }
 0x2c7   :  { %1688 = vst [vmem:[#allocation4] sm:$0xff] %v1686_v7  ;;  %v1687_v49 = vmax.f32 %v1684_v5, %v1685_v9  ;;  %2880 = vmatpush3.bf16.msra.mxu1 %v3291_v60  ;;  %v3293_v5 = vld [vmem:[%s4037_s9 + $0x8] sm:$0xff]   ;;  %v3294_v7 = vld [vmem:[%s4037_s9 + $0x10] sm:$0xff]   ;;  %v3295_v9 = vld [vmem:[%s4037_s9 + $0x18] sm:$0xff]  }
 0x2c8   :  { %2885 = vmatprep.subr.bf16.mxu1 %v3379_v20 }
 0x2c9   :  { %1689 = vst [vmem:[#allocation4 + $0x8] sm:$0xff] %v1687_v49  ;;  %v3296_v49 = vld [vmem:[%s4037_s9 + $0x20] sm:$0xff]  }
 0x2d0   :  { %v1691_v10 = vld [vmem:[#allocation4] ss:$8 sm:$0x3]  ;;  %v1805_v21 = vld [vmem:[#allocation4 + $0x1] ss:$8 sm:$0x3] }
 0x2d1   :  { %v1692_v48 = vpack.c.bf16 %v1691_v10, %v1691_v10  ;;  %v1806_v23 = vpack.c.bf16 %v1805_v21, %v1805_v21  ;;  %v1914_v12 = vld [vmem:[#allocation4 + $0x2] ss:$8 sm:$0x3]  ;;  %v2023_v41 = vld [vmem:[#allocation4 + $0x3] ss:$8 sm:$0x3] }
 0x2d2   :  { %v1915_v27 = vpack.c.bf16 %v1914_v12, %v1914_v12  ;;  %v2024_v44 = vpack.c.bf16 %v2023_v41, %v2023_v41  ;;  %v2132_v57 = vld [vmem:[#allocation4 + $0x4] ss:$8 sm:$0x3] }
 0x2d3   :  { %2782 = vmatmul.mubr.bf16.vlgmr.msra.gmra.mrb[16].mxu0 %v1692_v48  ;;  %v2133_v58 = vpack.c.bf16 %v2132_v57, %v2132_v57  ;;  %v3297_v10 = vld [vmem:[%s4037_s9 + $0x28] sm:$0xff]   ;;  %v3299_v48 = vld [vmem:[%s4037_s9 + $0x38] sm:$0xff]  }
 0x2d4   :  { %2786 = vmatpush3.bf16.msra.mxu0 %v3252_v47  ;;  %2801 = vmatprep.mubr.msk.bf16.mxu0 %vm3380_vm2, %v3379_v20  ;;  %v3298_v47 = vld [vmem:[%s4037_s9 + $0x30] sm:$0xff]  }
 0x2d5   :  { %2787 = vmatprep.subr.bf16.mxu0 %v3379_v20 }
 0x2d8   :  { %2788 = vmatpush3.bf16.msra.mxu0 %v3253_v8 }
 0x2d9   :  { %2789 = vmatprep.subr.bf16.mxu0 %v3379_v20 }
 0x2dc   :  { %2790 = vmatpush3.bf16.msra.mxu0 %v3254_v63 }
 0x2dd   :  { %2791 = vmatprep.subr.bf16.mxu0 %v3379_v20 }
 0x2e0   :  { %2792 = vmatpush3.bf16.msra.mxu0 %v3255_v46 }
 0x2e1   :  { %2793 = vmatprep.subr.bf16.mxu0 %v3379_v20 }
 0x2e4   :  { %2794 = vmatpush3.bf16.msra.mxu0 %v3256_v37 }
 0x2e5   :  { %2795 = vmatprep.subr.bf16.mxu0 %v3379_v20 }
 0x2e8   :  { %2796 = vmatpush3.bf16.msra.mxu0 %v3257_v17 }
 0x2e9   :  { %2797 = vmatprep.subr.bf16.mxu0 %v3379_v20 }
 0x2ec   :  { %2798 = vmatpush3.bf16.msra.mxu0 %v3258_v18 }
 0x2ed   :  { %2799 = vmatprep.subr.bf16.mxu0 %v3379_v20 }
 0x2f0   :  { %2800 = vmatpush3.bf16.msra.mxu0 %v3259_v19 }
 0x2f1   :  { %2805 = vmatprep.subr.bf16.mxu0 %v3379_v20 }
 0x2f3   :  { %2802 = vmatmul.mubr.bf16.vlgmr.msra.gmra.mrb[16].mxu0 %v1806_v23 }
 0x2f4   :  { %2806 = vmatpush3.bf16.msra.mxu0 %v3260_v22  ;;  %2821 = vmatprep.mubr.msk.bf16.mxu0 %vm3380_vm2, %v3379_v20 }
 0x2f5   :  { %2807 = vmatprep.subr.bf16.mxu0 %v3379_v20 }
 0x2f8   :  { %2808 = vmatpush3.bf16.msra.mxu0 %v3261_v24 }
 0x2f9   :  { %2809 = vmatprep.subr.bf16.mxu0 %v3379_v20 }
 0x2fc   :  { %2810 = vmatpush3.bf16.msra.mxu0 %v3262_v25 }
 0x2fd   :  { %2811 = vmatprep.subr.bf16.mxu0 %v3379_v20 }
 0x300   :  { %2812 = vmatpush3.bf16.msra.mxu0 %v3263_v26 }
 0x301   :  { %2813 = vmatprep.subr.bf16.mxu0 %v3379_v20 }
 0x304   :  { %2814 = vmatpush3.bf16.msra.mxu0 %v3264_v28 }
 0x305   :  { %2815 = vmatprep.subr.bf16.mxu0 %v3379_v20 }
 0x308   :  { %2816 = vmatpush3.bf16.msra.mxu0 %v3265_v29 }
 0x309   :  { %2817 = vmatprep.subr.bf16.mxu0 %v3379_v20 }
 0x30c   :  { %2818 = vmatpush3.bf16.msra.mxu0 %v3266_v30 }
 0x30d   :  { %2819 = vmatprep.subr.bf16.mxu0 %v3379_v20 }
 0x310   :  { %2820 = vmatpush3.bf16.msra.mxu0 %v3267_v31 }
 0x311   :  { %2825 = vmatprep.subr.bf16.mxu0 %v3379_v20 }
 0x313   :  { %2822 = vmatmul.mubr.bf16.vlgmr.msra.gmra.mrb[16].mxu0 %v1915_v27 }
 0x314   :  { %2826 = vmatpush3.bf16.msra.mxu0 %v3268_v3  ;;  %2841 = vmatprep.mubr.msk.bf16.mxu0 %vm3380_vm2, %v3379_v20 }
 0x315   :  { %2827 = vmatprep.subr.bf16.mxu0 %v3379_v20 }
 0x318   :  { %2828 = vmatpush3.bf16.msra.mxu0 %v3269_v32 }
 0x319   :  { %2829 = vmatprep.subr.bf16.mxu0 %v3379_v20 }
 0x31c   :  { %2830 = vmatpush3.bf16.msra.mxu0 %v3270_v33 }
 0x31d   :  { %2831 = vmatprep.subr.bf16.mxu0 %v3379_v20 }
 0x320   :  { %2832 = vmatpush3.bf16.msra.mxu0 %v3271_v34 }
 0x321   :  { %2833 = vmatprep.subr.bf16.mxu0 %v3379_v20 }
 0x324   :  { %2834 = vmatpush3.bf16.msra.mxu0 %v3272_v35 }
 0x325   :  { %2835 = vmatprep.subr.bf16.mxu0 %v3379_v20 }
 0x328   :  { %2836 = vmatpush3.bf16.msra.mxu0 %v3273_v36 }
 0x329   :  { %2837 = vmatprep.subr.bf16.mxu0 %v3379_v20 }
 0x32c   :  { %2838 = vmatpush3.bf16.msra.mxu0 %v3274_v39 }
 0x32d   :  { %2839 = vmatprep.subr.bf16.mxu0 %v3379_v20 }
 0x330   :  { %2840 = vmatpush3.bf16.msra.mxu0 %v3275_v40 }
 0x331   :  { %2845 = vmatprep.subr.bf16.mxu0 %v3379_v20 }
 0x333   :  { %2842 = vmatmul.mubr.bf16.vlgmr.msra.gmra.mrb[16].mxu0 %v2024_v44 }
 0x334   :  { %2846 = vmatpush3.bf16.msra.mxu0 %v3276_v43  ;;  %2861 = vmatprep.mubr.msk.bf16.mxu0 %vm3380_vm2, %v3379_v20 }
 0x335   :  { %2847 = vmatprep.subr.bf16.mxu0 %v3379_v20 }
 0x338   :  { %2848 = vmatpush3.bf16.msra.mxu0 %v3277_v50 }
 0x339   :  { %2849 = vmatprep.subr.bf16.mxu0 %v3379_v20 }
 0x33c   :  { %2850 = vmatpush3.bf16.msra.mxu0 %v3278_v51 }
 0x33d   :  { %2851 = vmatprep.subr.bf16.mxu0 %v3379_v20 }
 0x340   :  { %2852 = vmatpush3.bf16.msra.mxu0 %v3279_v52 }
 0x341   :  { %2853 = vmatprep.subr.bf16.mxu0 %v3379_v20 }
 0x344   :  { %2854 = vmatpush3.bf16.msra.mxu0 %v3280_v53 }
 0x345   :  { %2855 = vmatprep.subr.bf16.mxu0 %v3379_v20 }
 0x348   :  { %2856 = vmatpush3.bf16.msra.mxu0 %v3281_v54 }
 0x349   :  { %2857 = vmatprep.subr.bf16.mxu0 %v3379_v20 }
 0x34c   :  { %2858 = vmatpush3.bf16.msra.mxu0 %v3282_v55 }
 0x34d   :  { %2859 = vmatprep.subr.bf16.mxu0 %v3379_v20 }
 0x350   :  { %2860 = vmatpush3.bf16.msra.mxu0 %v3283_v56 }
 0x353   :  { %2862 = vmatmul.mubr.bf16.vlgmr.msra.gmra.mrb[16].mxu0 %v2133_v58 }
 0x426   :  { %v2233_v62 = vpop.f32.mrb[16].mxu0 }
 0x427   :  { %v2945_v42 = vadd.f32 %v2651_v61, %v2233_v62  ;;  %v2863_v0 = vpop.f32.mrb[17].mxu0 }
 0x428   :  { %v2236_v1 = vpop.f32.mrb[18].mxu0 }
 0x429   :  { %v2240_v38 = vmax.f32 %v2945_v42, 0.0  ;;  %v2864_v45 = vpop.f32.mrb[19].mxu0 }
 0x42b   :  { %v2241_v4 = vpack.c.bf16 %v2240_v38, %v2240_v38 }
 0x42d   :  { %2882 = vmatmul.mubr.bf16.vlgmr.msra.gmra.mrb[24].mxu1 %v2241_v4 }
 0x42e   :  { %2886 = vmatpush3.bf16.msra.mxu1 %v3292_v2  ;;  %2901 = vmatprep.mubr.msk.bf16.mxu1 %vm3380_vm2, %v3379_v20 }
 0x42f   :  { %2887 = vmatprep.subr.bf16.mxu1 %v3379_v20 }
 0x432   :  { %2888 = vmatpush3.bf16.msra.mxu1 %v3293_v5 }
 0x433   :  { %2889 = vmatprep.subr.bf16.mxu1 %v3379_v20 }
 0x436   :  { %2890 = vmatpush3.bf16.msra.mxu1 %v3294_v7 }
 0x437   :  { %2891 = vmatprep.subr.bf16.mxu1 %v3379_v20 }
 0x43a   :  { %2892 = vmatpush3.bf16.msra.mxu1 %v3295_v9 }
 0x43b   :  { %2893 = vmatprep.subr.bf16.mxu1 %v3379_v20 }
 0x43e   :  { %2894 = vmatpush3.bf16.msra.mxu1 %v3296_v49 }
 0x43f   :  { %2895 = vmatprep.subr.bf16.mxu1 %v3379_v20 }
 0x442   :  { %2896 = vmatpush3.bf16.msra.mxu1 %v3297_v10 }
 0x443   :  { %2897 = vmatprep.subr.bf16.mxu1 %v3379_v20 }
 0x446   :  { %2898 = vmatpush3.bf16.msra.mxu1 %v3298_v47 }
 0x447   :  { %2899 = vmatprep.subr.bf16.mxu1 %v3379_v20  ;;  %v2693_v20 = vld [vmem:[%s4038_s10] ss:$0 sm:$0xff] }
 0x44a   :  { %2900 = vmatpush3.bf16.msra.mxu1 %v3299_v48 }
 0x500   :  { %v2347_v8 = vpop.f32.mrb[24].mxu1 }
 0x501   :  { %v2348_v11 = vadd.f32 %v2684_v6, %v2347_v8  ;;  %v2883_v63 = vpop.f32.mrb[25].mxu1 }
 0x502   :  { %v2350_v13 = vpop.f32.mrb[26].mxu1 }
 0x503   :  { %v2353_v46 = vmax.f32 %v2348_v11, 0.0  ;;  %v2884_v14 = vpop.f32.mrb[27].mxu1 }
 0x505   :  { %v2354_v37 = vpack.c.bf16 %v2353_v46, %v2353_v46 }
 0x507   :  { %2902 = vmatmul.mubr.bf16.vlgmr.msra.gmra.mrb[28].mxu1 %v2354_v37 }
 0x5da   :  { %v2460_v16 = vpop.f32.mrb[28].mxu1 }
 0x5db   :  { %v2461_v17 = vadd.f32 %v2693_v20, %v2460_v16  ;;  %v2903_v15 = vpop.f32.mrb[29].mxu1 }
 0x5dc   :  { %v2463_v18 = vpop.f32.mrb[30].mxu1 }
 0x5dd   :  { %2466 = vst [vmem:[#allocation10] sm:$0x3] %v2461_v17  ;;  %v2904_v19 = vpop.f32.mrb[31].mxu1 }
 0x5de   :  { %3355 = shalt.err (!%p3352_p6)
}
 0x5df   :  { %s3356_s10 = scalar_lea.hbm %s4039_s11, 32 }
 0x5e0   :  { %p3357_p7 = scmp.ne.s32.totalorder %s4039_s11, %s3356_s10  ;;  %p3360_p8 = scmp.lt.u32.totalorder %s3356_s10, %s4039_s11 }
 0x5e2   :  { %p3362_p9 = pnand %p3360_p8, %p3357_p7 }
 0x5e4   :  { %3365 = shalt.err (!%p3362_p9)
}
 0x5e5   :  { %2476 = dma.vmem_to_hbm [thread:$0]  %s2474_s29, 32, %s4039_s11, [#allocation7]  }
 0x5e6   :  { %3370 = dma.done.wait [#allocation7], 32  }
 0x5e7   :  { %3371 = vsyncadd [#allocation7], 4294967264 }
 0x5e8   :  { %2480 = vsyncpa [#allocation6], 1 }
 0x5e9   :  { %2481 = vsyncpa [#allocation9], 1 }
 0x5ea   :  { %2482 = vsyncpa [#allocation7], 1 }

</bundles_post_ra>
